<compile_context>
chip_gen: v7x
topology: tpu7x:2x2x1
jax: 0.10.0
libtpu: 0.0.40
codegen_flags: <defaults>
</compile_context>

<pallas_src>
import jax
import jax.numpy as jnp
from jax.experimental import pallas as pl
from jax.experimental.pallas import tpu as pltpu

IN_DIM = 28 * 28   # 784
H1 = 800
H2 = 200
OUT_DIM = 10

# Lane-aligned (multiples of 128) padded sizes. Padding is numerically exact:
# zero weight columns + zero bias -> ReLU(0) = 0 -> zero weight rows downstream
# contribute nothing; padded logit columns get bias -1e30 so exp() underflows
# to 0 in the log_softmax reduction.
H1P = 896
H2P = 256
OUTP = 128
NEG_BIG = -1e30


def mlp_kernel(x_ref, w1_ref, b1_ref, w2_ref, b2_ref, w3_ref, b3_ref, out_ref):
    # x tile arrives as f32; cast to bf16 here (cast is hidden behind the DMA
    # pipeline instead of being a separate HBM pass in the wrapper).
    x = x_ref[...].astype(jnp.bfloat16)

    # fc1 + ReLU (MXU bf16 -> f32 accumulate)
    h1 = jnp.dot(x, w1_ref[...], preferred_element_type=jnp.float32) + b1_ref[...]
    h1 = jnp.maximum(h1, 0.0).astype(jnp.bfloat16)

    # fc2 + ReLU
    h2 = jnp.dot(h1, w2_ref[...], preferred_element_type=jnp.float32) + b2_ref[...]
    h2 = jnp.maximum(h2, 0.0).astype(jnp.bfloat16)

    # fc3 (padded to 128 logits; padded columns have bias -1e30), f32
    logits = jnp.dot(h2, w3_ref[...], preferred_element_type=jnp.float32) + b3_ref[...]

    # Numerically stable log_softmax along the last axis, all f32. The padded
    # columns sit at ~-1e30 so they never win the max and exp() -> 0 in the sum.
    m = jnp.max(logits, axis=-1, keepdims=True)
    shifted = logits - m
    lse = jnp.log(jnp.sum(jnp.exp(shifted), axis=-1, keepdims=True))
    out_ref[...] = shifted - lse   # lane-dense (tb, 128) store


def prepare_params(params):
    """One-time conversion: bf16 weights / f32 biases, zero-padded to aligned dims."""
    w1, b1, w2, b2, w3, b3 = params
    b1 = jnp.reshape(b1, (1, H1)).astype(jnp.float32)
    b2 = jnp.reshape(b2, (1, H2)).astype(jnp.float32)
    b3 = jnp.reshape(b3, (1, OUT_DIM)).astype(jnp.float32)

    w1p = jnp.zeros((IN_DIM, H1P), jnp.bfloat16).at[:, :H1].set(w1.astype(jnp.bfloat16))
    b1p = jnp.zeros((1, H1P), jnp.float32).at[:, :H1].set(b1)

    w2p = jnp.zeros((H1P, H2P), jnp.bfloat16).at[:H1, :H2].set(w2.astype(jnp.bfloat16))
    b2p = jnp.zeros((1, H2P), jnp.float32).at[:, :H2].set(b2)

    w3p = jnp.zeros((H2P, OUTP), jnp.bfloat16).at[:H2, :OUT_DIM].set(w3.astype(jnp.bfloat16))
    b3p = jnp.full((1, OUTP), NEG_BIG, jnp.float32).at[:, :OUT_DIM].set(b3)

    return (w1p, b1p, w2p, b2p, w3p, b3p)


def net_forward(x, prepared_params, *, tb=1024):
    """x: (B, 784) float32. prepared_params: output of prepare_params().
    Returns (B, 10) float32 log-probabilities."""
    w1p, b1p, w2p, b2p, w3p, b3p = prepared_params
    B = x.shape[0]

    # Batch tile: multiple of 8 sublanes, capped at tb.
    b8 = ((B + 7) // 8) * 8
    tb = min(tb, b8)
    # For large batches keep >= 2 grid steps so the "parallel" axis can shard
    # across both v7x TensorCores (no-op on v5e/v6e single-TC parts).
    if b8 >= 256 and b8 // tb < 2:
        tb = ((pl.cdiv(b8, 2) + 7) // 8) * 8
    b_pad = pl.cdiv(b8, tb) * tb

    if b_pad != B:
        x = jnp.pad(x, ((0, b_pad - B), (0, 0)))

    def resident_spec(shape):
        # Same block every grid step -> weights/biases stay pinned in VMEM.
        return pl.BlockSpec(shape, lambda i: (0, 0))

    weight_bytes = (w1p.size + w2p.size + w3p.size) * 2 \
                 + (b1p.size + b2p.size + b3p.size) * 4
    cost = pl.CostEstimate(
        flops=2 * b_pad * (IN_DIM * H1P + H1P * H2P + H2P * OUTP),
        transcendentals=b_pad * OUTP,
        bytes_accessed=weight_bytes + x.size * 4 + b_pad * OUTP * 4,
    )

    out = pl.pallas_call(
        mlp_kernel,
        out_shape=jax.ShapeDtypeStruct((b_pad, OUTP), jnp.float32),
        grid=(b_pad // tb,),
        in_specs=[
            pl.BlockSpec((tb, IN_DIM), lambda i: (i, 0)),   # x: tiled over batch
            resident_spec((IN_DIM, H1P)),
            resident_spec((1, H1P)),
            resident_spec((H1P, H2P)),
            resident_spec((1, H2P)),
            resident_spec((H2P, OUTP)),
            resident_spec((1, OUTP)),
        ],
        out_specs=pl.BlockSpec((tb, OUTP), lambda i: (i, 0)),
        compiler_params=pltpu.CompilerParams(
            dimension_semantics=("parallel",),
            vmem_limit_bytes=48 * 1024 * 1024,   # > v5e 16 MiB default, < v7x 64 MiB physical
        ),
        cost_estimate=cost,
    )(x, w1p, b1p, w2p, b2p, w3p, b3p)

    return out[:B, :OUT_DIM]


def init_params(key):
    """Deterministic init matching nn.Linear shapes (stored transposed: (in, out))."""
    dims = [(IN_DIM, H1), (H1, H2), (H2, OUT_DIM)]
    params = []
    for fan_in, fan_out in dims:
        kw, kb, key = jax.random.split(key, 3)
        bound = 1.0 / jnp.sqrt(fan_in)
        w = jax.random.uniform(kw, (fan_in, fan_out), jnp.float32, -bound, bound)
        b = jax.random.uniform(kb, (1, fan_out), jnp.float32, -bound, bound)
        params += [w, b]
    return params


def reference_forward(x, params):
    """Pure-JAX f32 reference of the PyTorch forward pass."""
    w1, b1, w2, b2, w3, b3 = params
    h1 = jnp.maximum(x @ w1 + b1, 0.0)
    h2 = jnp.maximum(h1 @ w2 + b2, 0.0)
    logits = h2 @ w3 + b3
    return jax.nn.log_softmax(logits, axis=1)


if __name__ == "__main__":
    key = jax.random.PRNGKey(0)
    k_x, k_p = jax.random.split(key)

    B = 8  # small demo batch (wrapper pads to the tile size internally)
    x = jax.random.normal(k_x, (B, IN_DIM), dtype=jnp.float32)
    params = init_params(k_p)
    prepared = prepare_params(params)   # one-time bf16 cast + alignment padding

    out = net_forward(x, prepared)
    out = jax.block_until_ready(out)

    assert out.shape == (B, OUT_DIM)

    # sanity 1: exp(log_softmax) rows must sum to ~1 (softmax math done in f32)
    row_sums = jnp.sum(jnp.exp(out), axis=1)
    assert bool(jnp.all(jnp.abs(row_sums - 1.0) < 1e-4))

    # sanity 2: matches the f32 reference within bf16-matmul tolerance
    ref = reference_forward(x, params)
    assert bool(jnp.max(jnp.abs(out - ref)) < 0.1)

    print("KERNEL_OK")
</pallas_src>

<mosaic_0001>
module attributes {stable_mosaic.version = 11 : i64} {
  func.func @mlp_kernel(%arg0: i32, %arg1: memref<8x784xf32, #tpu.memory_space<vmem>>, %arg2: memref<784x896xbf16, #tpu.memory_space<vmem>>, %arg3: memref<1x896xf32, #tpu.memory_space<vmem>>, %arg4: memref<896x256xbf16, #tpu.memory_space<vmem>>, %arg5: memref<1x256xf32, #tpu.memory_space<vmem>>, %arg6: memref<256x128xbf16, #tpu.memory_space<vmem>>, %arg7: memref<1x128xf32, #tpu.memory_space<vmem>>, %arg8: memref<8x128xf32, #tpu.memory_space<vmem>>) attributes {dimension_semantics = [#tpu.dimension_semantics<parallel>], iteration_bounds = array<i64: 1>, scalar_prefetch = 0 : i64, scratch_operands = 0 : i64, tpu.core_type = #tpu.core_type<tc>, window_params = [{transform_indices = @transform_0, window_bounds = array<i64: 8, 784>}, {pipeline_mode = #tpu.pipeline_mode<synchronous>, transform_indices = @transform_1, window_bounds = array<i64: 784, 896>}, {pipeline_mode = #tpu.pipeline_mode<synchronous>, transform_indices = @transform_2, window_bounds = array<i64: 1, 896>}, {pipeline_mode = #tpu.pipeline_mode<synchronous>, transform_indices = @transform_3, window_bounds = array<i64: 896, 256>}, {pipeline_mode = #tpu.pipeline_mode<synchronous>, transform_indices = @transform_4, window_bounds = array<i64: 1, 256>}, {pipeline_mode = #tpu.pipeline_mode<synchronous>, transform_indices = @transform_5, window_bounds = array<i64: 256, 128>}, {pipeline_mode = #tpu.pipeline_mode<synchronous>, transform_indices = @transform_6, window_bounds = array<i64: 1, 128>}, {transform_indices = @transform_7, window_bounds = array<i64: 8, 128>}]} {
    %c0 = arith.constant 0 : index
    %c0_0 = arith.constant 0 : index
    %0 = vector.load %arg1[%c0, %c0_0] : memref<8x784xf32, #tpu.memory_space<vmem>>, vector<8x784xf32>
    %1 = arith.truncf %0 : vector<8x784xf32> to vector<8x784xbf16>
    %c0_1 = arith.constant 0 : index
    %c0_2 = arith.constant 0 : index
    %2 = vector.load %arg2[%c0_1, %c0_2] : memref<784x896xbf16, #tpu.memory_space<vmem>>, vector<784x896xbf16>
    %cst = arith.constant dense<0.000000e+00> : vector<8x896xf32>
    %3 = tpu.matmul %1, %2, %cst {dimension_numbers = #tpu.dot_dimension_numbers<[1], [0], [0], [1], [0, 0, 1, 1], [], []>} : vector<8x784xbf16>, vector<784x896xbf16>, vector<8x896xf32> -> vector<8x896xf32>
    %c0_3 = arith.constant 0 : index
    %c0_4 = arith.constant 0 : index
    %4 = vector.load %arg3[%c0_3, %c0_4] : memref<1x896xf32, #tpu.memory_space<vmem>>, vector<1x896xf32>
    %5 = vector.broadcast %4 : vector<1x896xf32> to vector<8x896xf32>
    %6 = arith.addf %3, %5 : vector<8x896xf32>
    %cst_5 = arith.constant 0.000000e+00 : f32
    %7 = vector.broadcast %cst_5 : f32 to vector<8x896xf32>
    %8 = arith.maximumf %6, %7 : vector<8x896xf32>
    %9 = arith.truncf %8 : vector<8x896xf32> to vector<8x896xbf16>
    %c0_6 = arith.constant 0 : index
    %c0_7 = arith.constant 0 : index
    %10 = vector.load %arg4[%c0_6, %c0_7] : memref<896x256xbf16, #tpu.memory_space<vmem>>, vector<896x256xbf16>
    %cst_8 = arith.constant dense<0.000000e+00> : vector<8x256xf32>
    %11 = tpu.matmul %9, %10, %cst_8 {dimension_numbers = #tpu.dot_dimension_numbers<[1], [0], [0], [1], [0, 0, 1, 1], [], []>} : vector<8x896xbf16>, vector<896x256xbf16>, vector<8x256xf32> -> vector<8x256xf32>
    %c0_9 = arith.constant 0 : index
    %c0_10 = arith.constant 0 : index
    %12 = vector.load %arg5[%c0_9, %c0_10] : memref<1x256xf32, #tpu.memory_space<vmem>>, vector<1x256xf32>
    %13 = vector.broadcast %12 : vector<1x256xf32> to vector<8x256xf32>
    %14 = arith.addf %11, %13 : vector<8x256xf32>
    %cst_11 = arith.constant 0.000000e+00 : f32
    %15 = vector.broadcast %cst_11 : f32 to vector<8x256xf32>
    %16 = arith.maximumf %14, %15 : vector<8x256xf32>
    %17 = arith.truncf %16 : vector<8x256xf32> to vector<8x256xbf16>
    %c0_12 = arith.constant 0 : index
    %c0_13 = arith.constant 0 : index
    %18 = vector.load %arg6[%c0_12, %c0_13] : memref<256x128xbf16, #tpu.memory_space<vmem>>, vector<256x128xbf16>
    %cst_14 = arith.constant dense<0.000000e+00> : vector<8x128xf32>
    %19 = tpu.matmul %17, %18, %cst_14 {dimension_numbers = #tpu.dot_dimension_numbers<[1], [0], [0], [1], [0, 0, 1, 1], [], []>} : vector<8x256xbf16>, vector<256x128xbf16>, vector<8x128xf32> -> vector<8x128xf32>
    %c0_15 = arith.constant 0 : index
    %c0_16 = arith.constant 0 : index
    %20 = vector.load %arg7[%c0_15, %c0_16] : memref<1x128xf32, #tpu.memory_space<vmem>>, vector<1x128xf32>
    %21 = vector.broadcast %20 : vector<1x128xf32> to vector<8x128xf32>
    %22 = arith.addf %19, %21 : vector<8x128xf32>
    %cst_17 = arith.constant dense<0xFF800000> : vector<8xf32>
    %23 = vector.multi_reduction <maximumf>, %22, %cst_17 [1] : vector<8x128xf32> to vector<8xf32>
    %24 = vector.shape_cast %23 : vector<8xf32> to vector<8x1xf32>
    %25 = vector.broadcast %24 : vector<8x1xf32> to vector<8x128xf32>
    %26 = arith.subf %22, %25 : vector<8x128xf32>
    %27 = math.exp %26 : vector<8x128xf32>
    %cst_18 = arith.constant dense<0.000000e+00> : vector<8xf32>
    %28 = vector.multi_reduction <add>, %27, %cst_18 [1] : vector<8x128xf32> to vector<8xf32>
    %29 = vector.shape_cast %28 : vector<8xf32> to vector<8x1xf32>
    %30 = math.log %29 : vector<8x1xf32>
    %31 = vector.broadcast %30 : vector<8x1xf32> to vector<8x128xf32>
    %32 = arith.subf %26, %31 : vector<8x128xf32>
    %c0_19 = arith.constant 0 : index
    %c0_20 = arith.constant 0 : index
    %33 = vector.load %arg8[%c0_19, %c0_20] : memref<8x128xf32, #tpu.memory_space<vmem>>, vector<8x128xf32>
    tpu.vector_store %arg8[%c0_19, %c0_20], %32 {strides = array<i32>} : memref<8x128xf32, #tpu.memory_space<vmem>>, vector<8x128xf32>,
    return
  }
  func.func @transform_0(%arg0: i32) -> (i32, i32) {
    %c0_i32 = arith.constant 0 : i32
    %c0_i32_0 = arith.constant 0 : i32
    return %arg0, %c0_i32 : i32, i32
  }
  func.func @transform_1(%arg0: i32) -> (i32, i32) {
    %c0_i32 = arith.constant 0 : i32
    %c0_i32_0 = arith.constant 0 : i32
    %c0_i32_1 = arith.constant 0 : i32
    return %c0_i32, %c0_i32_0 : i32, i32
  }
  func.func @transform_2(%arg0: i32) -> (i32, i32) {
    %c0_i32 = arith.constant 0 : i32
    %c0_i32_0 = arith.constant 0 : i32
    %c0_i32_1 = arith.constant 0 : i32
    return %c0_i32, %c0_i32_0 : i32, i32
  }
  func.func @transform_3(%arg0: i32) -> (i32, i32) {
    %c0_i32 = arith.constant 0 : i32
    %c0_i32_0 = arith.constant 0 : i32
    %c0_i32_1 = arith.constant 0 : i32
    return %c0_i32, %c0_i32_0 : i32, i32
  }
  func.func @transform_4(%arg0: i32) -> (i32, i32) {
    %c0_i32 = arith.constant 0 : i32
    %c0_i32_0 = arith.constant 0 : i32
    %c0_i32_1 = arith.constant 0 : i32
    return %c0_i32, %c0_i32_0 : i32, i32
  }
  func.func @transform_5(%arg0: i32) -> (i32, i32) {
    %c0_i32 = arith.constant 0 : i32
    %c0_i32_0 = arith.constant 0 : i32
    %c0_i32_1 = arith.constant 0 : i32
    return %c0_i32, %c0_i32_0 : i32, i32
  }
  func.func @transform_6(%arg0: i32) -> (i32, i32) {
    %c0_i32 = arith.constant 0 : i32
    %c0_i32_0 = arith.constant 0 : i32
    %c0_i32_1 = arith.constant 0 : i32
    return %c0_i32, %c0_i32_0 : i32, i32
  }
  func.func @transform_7(%arg0: i32) -> (i32, i32) {
    %c0_i32 = arith.constant 0 : i32
    %c0_i32_0 = arith.constant 0 : i32
    return %arg0, %c0_i32 : i32, i32
  }
}

</mosaic_0001>

<bundles_post_ra>
// kernel: tpu_custom_call.1
= control target key start
LH: loop header
LB: loop body
LE: loop exit
PB: predicated region body
PF: predicated region fallthrough
CT: control target
= control target key end

     0   :  { %12 = vsyncpa [#allocation3], 0  ;;  %s5801_s0 = inlined_call_operand.hbm [shape: f32[8,784], index: 0, kind: input, shape index: {}]   ;;  %s5802_s1 = inlined_call_operand.hbm [shape: bf16[784,896], index: 1, kind: input, shape index: {}]   ;;  %s5803_s2 = inlined_call_operand.hbm [shape: f32[1,896], index: 2, kind: input, shape index: {}]   ;;  %s5804_s3 = inlined_call_operand.hbm [shape: bf16[896,256], index: 3, kind: input, shape index: {}]   ;;  %s5805_s4 = inlined_call_operand.hbm [shape: f32[1,256], index: 4, kind: input, shape index: {}]   ;;  %s5806_s5 = inlined_call_operand.hbm [shape: bf16[256,128], index: 5, kind: input, shape index: {}]   ;;  %s5807_s6 = inlined_call_operand.hbm [shape: f32[1,128], index: 6, kind: input, shape index: {}]   ;;  %s5808_s7 = inlined_call_operand.hbm [shape: f32[8,128], index: 7, kind: output, shape index: {}]  }
   0x1   :  { %13 = vsyncpa [#allocation6], 0 }
   0x2   :  { %14 = vsyncpa [#allocation9], 0 }
   0x3   :  { %15 = vsyncpa [#allocation12], 0 }
   0x4   :  { %16 = vsyncpa [#allocation4], 0  ;;  %s5551_s24 = smov [#allocation5]   ;;  %s5365_s28 = scalar_lea.hbm %s5802_s1, 43904 }
   0x5   :  { %s32_s25 = sshll.u32 %s5551_s24, 4  ;;  %p5366_p0 = scmp.ne.s32.totalorder %s5802_s1, %s5365_s28  ;;  %s33_s25 = int_to_ptr.vmem [resolvable:$true] %s32_s25 }
   0x6   :  { %p5369_p1 = scmp.lt.u32.totalorder %s5365_s28, %s5802_s1 }
   0x8   :  { %p5371_p2 = pnand %p5369_p1, %p5366_p0 }
   0xa   :  { %5374 = shalt.err (!%p5371_p2)
}
   0xb   :  { %s5375_s10 = scalar_lea.vmem %s33_s25, 43904  ;;  %p5380_p4 = scmp.lt.s32.totalorder %s33_s25, %s33_s25 }
   0xc   :  { %p5376_p3 = scmp.ne.s32.totalorder %s33_s25, %s5375_s10  ;;  %p5381_p5 = scmp.lt.s32.totalorder %s5375_s10, %s5375_s10 }
   0xe   :  { %p5382_p6 = por %p5381_p5, %p5380_p4 }
  0x10   :  { %p5383_p7 = pnand %p5382_p6, %p5376_p3 }
  0x12   :  { %5386 = shalt.err (!%p5383_p7)
}
  0x13   :  { %s5552_s11 = smov 448   ;;  %s5553_s12 = smov 28  }
  0x14   :  { %38 = dma.hbm_to_vmem [thread:$0]  %s5802_s1, 43904, %s33_s25, [#allocation6], %s5552_s11, %s5552_s11, %s5553_s12  }
  0x15   :  { %s5554_s15 = smov [#allocation8]   ;;  %s5387_s19 = scalar_lea.hbm %s5804_s3, 14336 }
  0x16   :  { %s54_s16 = sshll.u32 %s5554_s15, 4  ;;  %p5388_p8 = scmp.ne.s32.totalorder %s5804_s3, %s5387_s19  ;;  %s55_s16 = int_to_ptr.vmem [resolvable:$true] %s54_s16 }
  0x17   :  { %p5391_p9 = scmp.lt.u32.totalorder %s5387_s19, %s5804_s3 }
  0x19   :  { %p5393_p10 = pnand %p5391_p9, %p5388_p8 }
  0x1b   :  { %5396 = shalt.err (!%p5393_p10)
}
  0x1c   :  { %s5397_s24 = scalar_lea.vmem %s55_s16, 14336  ;;  %p5402_p12 = scmp.lt.s32.totalorder %s55_s16, %s55_s16 }
  0x1d   :  { %p5398_p11 = scmp.ne.s32.totalorder %s55_s16, %s5397_s24  ;;  %p5403_p13 = scmp.lt.s32.totalorder %s5397_s24, %s5397_s24 }
  0x1f   :  { %p5404_p0 = por %p5403_p13, %p5402_p12 }
  0x21   :  { %p5405_p1 = pnand %p5404_p0, %p5398_p11 }
  0x23   :  { %5408 = shalt.err (!%p5405_p1)
}
  0x24   :  { %s5555_s1 = smov 128   ;;  %s5556_s25 = smov 8  }
  0x25   :  { %60 = dma.hbm_to_vmem [thread:$0]  %s5804_s3, 14336, %s55_s16, [#allocation9], %s5555_s1, %s5555_s1, %s5556_s25  }
  0x26   :  { %s5557_s28 = smov [#allocation11]   ;;  %s5409_s9 = scalar_lea.hbm %s5806_s5, 2048 }
  0x27   :  { %s76_s29 = sshll.u32 %s5557_s28, 4  ;;  %p5410_p2 = scmp.ne.s32.totalorder %s5806_s5, %s5409_s9  ;;  %s77_s29 = int_to_ptr.vmem [resolvable:$true] %s76_s29 }
  0x28   :  { %p5413_p3 = scmp.lt.u32.totalorder %s5409_s9, %s5806_s5 }
  0x2a   :  { %p5415_p4 = pnand %p5413_p3, %p5410_p2 }
  0x2c   :  { %5418 = shalt.err (!%p5415_p4)
}
  0x2d   :  { %s5419_s14 = scalar_lea.vmem %s77_s29, 2048  ;;  %p5424_p6 = scmp.lt.s32.totalorder %s77_s29, %s77_s29 }
  0x2e   :  { %p5420_p5 = scmp.ne.s32.totalorder %s77_s29, %s5419_s14  ;;  %p5425_p7 = scmp.lt.s32.totalorder %s5419_s14, %s5419_s14 }
  0x30   :  { %p5426_p8 = por %p5425_p7, %p5424_p6 }
  0x32   :  { %p5427_p9 = pnand %p5426_p8, %p5420_p5 }
  0x34   :  { %5430 = shalt.err (!%p5427_p9)
}
  0x35   :  { %s5558_s3 = smov 64   ;;  %s5559_s15 = smov 4  }
  0x36   :  { %82 = dma.hbm_to_vmem [thread:$0]  %s5806_s5, 2048, %s77_s29, [#allocation12], %s5558_s3, %s5558_s3, %s5559_s15  }
  0x37   :  { %s5560_s18 = smov [#allocation2]   ;;  %s5561_s20 = smov [#allocation7]  }
  0x38   :  { %s23_s19 = sshll.u32 %s5560_s18, 4  ;;  %s45_s21 = sshll.u32 %s5561_s20, 4  ;;  %s24_s19 = int_to_ptr.vmem [resolvable:$true] %s23_s19  ;;  %s46_s21 = int_to_ptr.vmem [resolvable:$true] %s45_s21 }
  0x39   :  { %s5431_s24 = scalar_lea.hbm %s5801_s0, 896 }
  0x3a   :  { %p5432_p10 = scmp.ne.s32.totalorder %s5801_s0, %s5431_s24  ;;  %p5435_p11 = scmp.lt.u32.totalorder %s5431_s24, %s5801_s0 }
  0x3c   :  { %p5437_p12 = pnand %p5435_p11, %p5432_p10 }
  0x3e   :  { %5440 = shalt.err (!%p5437_p12)
}
  0x3f   :  { %s5441_s5 = scalar_lea.vmem %s24_s19, 896  ;;  %p5446_p0 = scmp.lt.s32.totalorder %s24_s19, %s24_s19 }
  0x40   :  { %p5442_p13 = scmp.ne.s32.totalorder %s24_s19, %s5441_s5  ;;  %p5447_p1 = scmp.lt.s32.totalorder %s5441_s5, %s5441_s5 }
  0x42   :  { %p5448_p2 = por %p5447_p1, %p5446_p0 }
  0x44   :  { %p5449_p3 = pnand %p5448_p2, %p5442_p13 }
  0x46   :  { %5452 = shalt.err (!%p5449_p3)
}
  0x47   :  { %26 = dma.hbm_to_vmem [thread:$0]  %s5801_s0, 896, %s24_s19, [#allocation3]  }
  0x48   :  { %s5453_s9 = scalar_lea.hbm %s5803_s2, 112 }
  0x49   :  { %p5454_p4 = scmp.ne.s32.totalorder %s5803_s2, %s5453_s9  ;;  %p5457_p5 = scmp.lt.u32.totalorder %s5453_s9, %s5803_s2 }
  0x4b   :  { %p5459_p6 = pnand %p5457_p5, %p5454_p4 }
  0x4d   :  { %5462 = shalt.err (!%p5459_p6)
}
  0x4e   :  { %s5463_s14 = scalar_lea.vmem %s46_s21, 112  ;;  %s5467_s3 = scalar_lea.vmem %s46_s21, 128 }
  0x4f   :  { %p5464_p7 = scmp.ne.s32.totalorder %s46_s21, %s5463_s14  ;;  %p5468_p8 = scmp.lt.s32.totalorder %s46_s21, %s46_s21 }
  0x50   :  { %p5469_p9 = scmp.lt.s32.totalorder %s5467_s3, %s5463_s14 }
  0x52   :  { %p5470_p10 = por %p5469_p9, %p5468_p8 }
  0x54   :  { %p5471_p11 = pnand %p5470_p10, %p5464_p7 }
  0x56   :  { %5474 = shalt.err (!%p5471_p11)
}
  0x57   :  { %48 = dma.hbm_to_vmem [thread:$0]  %s5803_s2, 112, %s46_s21, [#allocation6]  }
  0x58   :  { %s5562_s16 = smov [#allocation10]   ;;  %s5563_s18 = smov [#allocation13]  }
  0x59   :  { %s67_s17 = sshll.u32 %s5562_s16, 4  ;;  %s89_s19 = sshll.u32 %s5563_s18, 4  ;;  %s68_s17 = int_to_ptr.vmem [resolvable:$true] %s67_s17  ;;  %s90_s19 = int_to_ptr.vmem [resolvable:$true] %s89_s19 }
  0x5a   :  { %s5475_s23 = scalar_lea.hbm %s5805_s4, 32 }
  0x5b   :  { %p5476_p12 = scmp.ne.s32.totalorder %s5805_s4, %s5475_s23  ;;  %p5479_p13 = scmp.lt.u32.totalorder %s5475_s23, %s5805_s4 }
  0x5d   :  { %p5481_p0 = pnand %p5479_p13, %p5476_p12 }
  0x5f   :  { %5484 = shalt.err (!%p5481_p0)
}
  0x60   :  { %s5485_s2 = scalar_lea.vmem %s68_s17, 32  ;;  %p5490_p2 = scmp.lt.s32.totalorder %s68_s17, %s68_s17 }
  0x61   :  { %p5486_p1 = scmp.ne.s32.totalorder %s68_s17, %s5485_s2  ;;  %p5491_p3 = scmp.lt.s32.totalorder %s5485_s2, %s5485_s2 }
  0x63   :  { %p5492_p4 = por %p5491_p3, %p5490_p2 }
  0x65   :  { %p5493_p5 = pnand %p5492_p4, %p5486_p1 }
  0x67   :  { %5496 = shalt.err (!%p5493_p5)
}
  0x68   :  { %70 = dma.hbm_to_vmem [thread:$0]  %s5805_s4, 32, %s68_s17, [#allocation9]  }
  0x69   :  { %s5497_s29 = scalar_lea.hbm %s5807_s6, 16 }
  0x6a   :  { %p5498_p6 = scmp.ne.s32.totalorder %s5807_s6, %s5497_s29  ;;  %p5501_p7 = scmp.lt.u32.totalorder %s5497_s29, %s5807_s6 }
  0x6c   :  { %p5503_p8 = pnand %p5501_p7, %p5498_p6 }
  0x6e   :  { %5506 = shalt.err (!%p5503_p8)
}
  0x6f   :  { %s5507_s11 = scalar_lea.vmem %s90_s19, 16  ;;  %s5511_s12 = scalar_lea.vmem %s90_s19, 32 }
  0x70   :  { %p5508_p9 = scmp.ne.s32.totalorder %s90_s19, %s5507_s11  ;;  %p5512_p10 = scmp.lt.s32.totalorder %s90_s19, %s90_s19 }
  0x71   :  { %p5513_p11 = scmp.lt.s32.totalorder %s5511_s12, %s5507_s11 }
  0x73   :  { %p5514_p12 = por %p5513_p11, %p5512_p10 }
  0x75   :  { %p5515_p13 = pnand %p5514_p12, %p5508_p9 }
  0x77   :  { %5518 = shalt.err (!%p5515_p13)
}
  0x78   :  { %92 = dma.hbm_to_vmem [thread:$0]  %s5807_s6, 16, %s90_s19, [#allocation12]  }
  0x79   :  { %5541 = dma.done.wait [#allocation3], 896  }
  0x7a   :  { %5542 = vsyncadd [#allocation3], 4294966400 }
  0x7b   :  { %5543 = dma.done.wait [#allocation6], 44016  }
  0x7c   :  { %5544 = vsyncadd [#allocation6], 4294923280 }
  0x7d   :  { %5545 = dma.done.wait [#allocation9], 14368  }
  0x7e   :  { %5546 = vsyncadd [#allocation9], 4294952928 }
  0x7f   :  { %5547 = dma.done.wait [#allocation12], 2064  }
  0x80   :  { %5548 = vsyncadd [#allocation12], 4294965232  ;;  %v5564_v0 = vmov 0   ;;  %v4687_v1 = vld [vmem:[#allocation5 + $0x4] ss:$28 sps:$4 sm:$0xff]   ;;  %v116_v14 = vld [vmem:[#allocation2 + $0x8] sm:$0xff] }
  0x81   :  { %2481 = vmatprep.mubr.bf16.mxu1 %v5564_v0  ;;  %v4689_v2 = vld [vmem:[#allocation5] ss:$28 sps:$4 sm:$0xff]   ;;  %2326 = vmatprep.subr.bf16.mxu0 %v4687_v1  ;;  %v4692_v4 = vld [vmem:[#allocation5 + $0x38] ss:$28 sps:$4 sm:$0xff]   ;;  %v4695_v6 = vld [vmem:[#allocation5 + $0x70] ss:$28 sps:$4 sm:$0xff]   ;;  %v5693_v15 = vpack.c.bf16 %v116_v14, %v116_v14 }
  0x82   :  { %v4690_v3 = vld [vmem:[#allocation5 + $0x3c] ss:$28 sps:$4 sm:$0xff]   ;;  %2327 = vmatpush1.bf16.msra.mxu0 %v4689_v2  ;;  %v4693_v5 = vld [vmem:[#allocation5 + $0x74] ss:$28 sps:$4 sm:$0xff]   ;;  %v4696_v7 = vld [vmem:[#allocation5 + $0xac] ss:$28 sps:$4 sm:$0xff]  }
  0x83   :  { %2328 = vmatprep.subr.bf16.mxu0 %v4690_v3  ;;  %v4698_v8 = vld [vmem:[#allocation5 + $0xa8] ss:$28 sps:$4 sm:$0xff]   ;;  %v4701_v10 = vld [vmem:[#allocation5 + $0xe0] ss:$28 sps:$4 sm:$0xff]   ;;  %v4704_v12 = vld [vmem:[#allocation5 + $0x118] ss:$28 sps:$4 sm:$0xff]   ;;  %2358 = vmatprep.mubr.bf16.mxu0 %v5693_v15 }
  0x84   :  { %v4699_v9 = vld [vmem:[#allocation5 + $0xe4] ss:$28 sps:$4 sm:$0xff]   ;;  %v4702_v11 = vld [vmem:[#allocation5 + $0x11c] ss:$28 sps:$4 sm:$0xff]   ;;  %v4705_v13 = vld [vmem:[#allocation5 + $0x154] ss:$28 sps:$4 sm:$0xff]  }
  0x85   :  { %v4707_v16 = vld [vmem:[#allocation5 + $0x150] ss:$28 sps:$4 sm:$0xff]   ;;  %v4710_v18 = vld [vmem:[#allocation5 + $0x188] ss:$28 sps:$4 sm:$0xff]   ;;  %v4713_v20 = vld [vmem:[#allocation5 + $0x1c0] ss:$28 sps:$4 sm:$0xff]  }
  0x86   :  { %2329 = vmatpush1.bf16.msra.mxu0 %v4692_v4  ;;  %v4708_v17 = vld [vmem:[#allocation5 + $0x18c] ss:$28 sps:$4 sm:$0xff]   ;;  %v4711_v19 = vld [vmem:[#allocation5 + $0x1c4] ss:$28 sps:$4 sm:$0xff]   ;;  %v4714_v21 = vld [vmem:[#allocation5 + $0x1fc] ss:$28 sps:$4 sm:$0xff]  }
  0x87   :  { %2330 = vmatprep.subr.bf16.mxu0 %v4693_v5  ;;  %v4716_v22 = vld [vmem:[#allocation5 + $0x1f8] ss:$28 sps:$4 sm:$0xff]   ;;  %v4762_v23 = vld [vmem:[#allocation5 + $0xa84] ss:$28 sps:$4 sm:$0xff]   ;;  %v4770_v27 = vld [vmem:[#allocation5 + $0x38c] ss:$28 sps:$4 sm:$0xff]  }
  0x88   :  { %v4764_v24 = vld [vmem:[#allocation5 + $0xa80] ss:$28 sps:$4 sm:$0xff]   ;;  %v4717_v25 = vld [vmem:[#allocation5 + $0x234] ss:$28 sps:$4 sm:$0xff]   ;;  %2449 = vmatprep.subr.bf16.mxu1 %v4762_v23  ;;  %v4768_v26 = vld [vmem:[#allocation5 + $0x388] ss:$28 sps:$4 sm:$0xff]  }
  0x89   :  { %2450 = vmatpush1.bf16.msra.mxu1 %v4764_v24  ;;  %v121_v28 = vld [vmem:[#allocation2 + $0x30] sm:$0xff]  ;;  %vm2322_vm0 = vcmask 130048   ;;  %v4719_v29 = vld [vmem:[#allocation5 + $0x230] ss:$28 sps:$4 sm:$0xff]   ;;  %v4776_v32 = vld [vmem:[#allocation5 + $0x3c4] ss:$28 sps:$4 sm:$0xff]  }
  0x8a   :  { %2331 = vmatpush1.bf16.msra.mxu0 %v4695_v6  ;;  %2531 = vmatprep.subr.bf16.mxu1 %v4770_v27  ;;  %v5696_v30 = vpack.c.bf16 %v121_v28, %v121_v28  ;;  %v4720_v31 = vld [vmem:[#allocation5 + $0x26c] ss:$28 sps:$4 sm:$0xff]   ;;  %v4774_v33 = vld [vmem:[#allocation5 + $0x3c0] ss:$28 sps:$4 sm:$0xff]   ;;  %v4780_v37 = vld [vmem:[#allocation5 + $0x3f8] ss:$28 sps:$4 sm:$0xff]  }
  0x8b   :  { %2332 = vmatprep.subr.bf16.mxu0 %v4696_v7  ;;  %v4722_v34 = vld [vmem:[#allocation5 + $0x268] ss:$28 sps:$4 sm:$0xff]   ;;  %v4782_v35 = vld [vmem:[#allocation5 + $0x3fc] ss:$28 sps:$4 sm:$0xff]   ;;  %v4788_v39 = vld [vmem:[#allocation5 + $0x434] ss:$28 sps:$4 sm:$0xff]  }
  0x8c   :  { %4391 = vmatmul.mubr.msk.bf16.vlgmr.msra.gmra.mrb[0].mxu1 %vm2322_vm0, %v5696_v30  ;;  %v4723_v36 = vld [vmem:[#allocation5 + $0x2a4] ss:$28 sps:$4 sm:$0xff]   ;;  %v4726_v40 = vld [vmem:[#allocation5 + $0x2dc] ss:$28 sps:$4 sm:$0xff]   ;;  %v4786_v41 = vld [vmem:[#allocation5 + $0x430] ss:$28 sps:$4 sm:$0xff]  }
  0x8d   :  { %2532 = vmatpush1.bf16.msra.mxu1 %v4768_v26  ;;  %v4725_v38 = vld [vmem:[#allocation5 + $0x2a0] ss:$28 sps:$4 sm:$0xff]   ;;  %v4728_v42 = vld [vmem:[#allocation5 + $0x2d8] ss:$28 sps:$4 sm:$0xff]   ;;  %v4794_v43 = vld [vmem:[#allocation5 + $0x46c] ss:$28 sps:$4 sm:$0xff]  }
  0x8e   :  { %2333 = vmatpush1.bf16.msra.mxu0 %v4698_v8  ;;  %2533 = vmatprep.subr.bf16.mxu1 %v4776_v32  ;;  %v4729_v44 = vld [vmem:[#allocation5 + $0x314] ss:$28 sps:$4 sm:$0xff]   ;;  %v4792_v45 = vld [vmem:[#allocation5 + $0x468] ss:$28 sps:$4 sm:$0xff]   ;;  %v4798_v53 = vld [vmem:[#allocation5 + $0x4a0] ss:$28 sps:$4 sm:$0xff]  }
  0x8f   :  { %2334 = vmatprep.subr.bf16.mxu0 %v4699_v9  ;;  %v118_v46 = vld [vmem:[#allocation2 + $0x18] sm:$0xff]  ;;  %v4731_v47 = vld [vmem:[#allocation5 + $0x310] ss:$28 sps:$4 sm:$0xff]   ;;  %v4806_v54 = vld [vmem:[#allocation5 + $0x4dc] ss:$28 sps:$4 sm:$0xff]   ;;  %vm5566_vm1 = vmmov 0  }
  0x90   :  { %v4800_v48 = vld [vmem:[#allocation5 + $0x4a4] ss:$28 sps:$4 sm:$0xff]   ;;  %v5700_v49 = vpack.c.bf16 %v118_v46, %v118_v46  ;;  %v4732_v50 = vld [vmem:[#allocation5 + $0x34c] ss:$28 sps:$4 sm:$0xff]   ;;  %v4804_v58 = vld [vmem:[#allocation5 + $0x4d8] ss:$28 sps:$4 sm:$0xff]  }
  0x91   :  { %2534 = vmatpush1.bf16.msra.mxu1 %v4774_v33  ;;  %v4734_v51 = vld [vmem:[#allocation5 + $0x348] ss:$28 sps:$4 sm:$0xff]   ;;  %v4735_v56 = vld [vmem:[#allocation5 + $0x380] ss:$28 sps:$4 sm:$0xff]   ;;  %v4812_v60 = vld [vmem:[#allocation5 + $0x514] ss:$28 sps:$4 sm:$0xff]  }
  0x92   :  { %2335 = vmatpush1.bf16.msra.mxu0 %v4701_v10  ;;  %2535 = vmatprep.subr.bf16.mxu1 %v4782_v35  ;;  %v115_v52 = vld [vmem:[#allocation2] sm:$0xff]  ;;  %v4737_v55 = vld [vmem:[#allocation5 + $0x384] ss:$28 sps:$4 sm:$0xff]   ;;  %v4740_v59 = vld [vmem:[#allocation5 + $0x3bc] ss:$28 sps:$4 sm:$0xff]   ;;  %s5567_s6 = smov [#allocation14]  }
  0x93   :  { %2336 = vmatprep.subr.bf16.mxu0 %v4702_v11  ;;  %2563 = vmatprep.mubr.bf16.mxu1 %v5700_v49  ;;  %v5703_v57 = vpack.c.bf16 %v115_v52, %v115_v52  ;;  %v4738_v61 = vld [vmem:[#allocation5 + $0x3b8] ss:$28 sps:$4 sm:$0xff]   ;;  %v4810_v62 = vld [vmem:[#allocation5 + $0x510] ss:$28 sps:$4 sm:$0xff]   ;;  %v4816_v3 = vld [vmem:[#allocation5 + $0x548] ss:$28 sps:$4 sm:$0xff]  }
  0x94   :  { %v4818_v63 = vld [vmem:[#allocation5 + $0x54c] ss:$28 sps:$4 sm:$0xff]   ;;  %v4743_v1 = vld [vmem:[#allocation5 + $0x3f4] ss:$28 sps:$4 sm:$0xff]   ;;  %v4824_v4 = vld [vmem:[#allocation5 + $0x584] ss:$28 sps:$4 sm:$0xff]  }
  0x95   :  { %2536 = vmatpush1.bf16.msra.mxu1 %v4780_v37  ;;  %v4741_v2 = vld [vmem:[#allocation5 + $0x3f0] ss:$28 sps:$4 sm:$0xff]   ;;  %v4744_v6 = vld [vmem:[#allocation5 + $0x428] ss:$28 sps:$4 sm:$0xff]   ;;  %v4822_v7 = vld [vmem:[#allocation5 + $0x580] ss:$28 sps:$4 sm:$0xff]  }
  0x96   :  { %2337 = vmatpush1.bf16.msra.mxu0 %v4704_v12  ;;  %2537 = vmatprep.subr.bf16.mxu1 %v4788_v39  ;;  %v4746_v5 = vld [vmem:[#allocation5 + $0x42c] ss:$28 sps:$4 sm:$0xff]   ;;  %v4830_v8 = vld [vmem:[#allocation5 + $0x5bc] ss:$28 sps:$4 sm:$0xff]   ;;  %v4749_v9 = vld [vmem:[#allocation5 + $0x464] ss:$28 sps:$4 sm:$0xff]  }
  0x97   :  { %2338 = vmatprep.subr.bf16.mxu0 %v4705_v13  ;;  %v4747_v10 = vld [vmem:[#allocation5 + $0x460] ss:$28 sps:$4 sm:$0xff]   ;;  %v4828_v11 = vld [vmem:[#allocation5 + $0x5b8] ss:$28 sps:$4 sm:$0xff]   ;;  %v4756_v23 = vld [vmem:[#allocation5 + $0x508] ss:$28 sps:$4 sm:$0xff]  }
  0x98   :  { %v4836_v12 = vld [vmem:[#allocation5 + $0x5f4] ss:$28 sps:$4 sm:$0xff]   ;;  %v4752_v13 = vld [vmem:[#allocation5 + $0x49c] ss:$28 sps:$4 sm:$0xff]   ;;  %v4761_v26 = vld [vmem:[#allocation5 + $0x544] ss:$28 sps:$4 sm:$0xff]  }
  0x99   :  { %2538 = vmatpush1.bf16.msra.mxu1 %v4786_v41  ;;  %v4750_v14 = vld [vmem:[#allocation5 + $0x498] ss:$28 sps:$4 sm:$0xff]   ;;  %v4846_v24 = vld [vmem:[#allocation5 + $0x660] ss:$28 sps:$4 sm:$0xff]   ;;  %v4858_v32 = vld [vmem:[#allocation5 + $0x6d0] ss:$28 sps:$4 sm:$0xff]  }
  0x9a   :  { %2339 = vmatpush1.bf16.msra.mxu0 %v4707_v16  ;;  %2539 = vmatprep.subr.bf16.mxu1 %v4794_v43  ;;  %v4834_v16 = vld [vmem:[#allocation5 + $0x5f0] ss:$28 sps:$4 sm:$0xff]   ;;  %v4759_v27 = vld [vmem:[#allocation5 + $0x540] ss:$28 sps:$4 sm:$0xff]   ;;  %v4852_v28 = vld [vmem:[#allocation5 + $0x698] ss:$28 sps:$4 sm:$0xff]  }
  0x9b   :  { %2340 = vmatprep.subr.bf16.mxu0 %v4708_v17  ;;  %v4842_v17 = vld [vmem:[#allocation5 + $0x62c] ss:$28 sps:$4 sm:$0xff]   ;;  %v4765_v33 = vld [vmem:[#allocation5 + $0x578] ss:$28 sps:$4 sm:$0xff]   ;;  %v4872_v41 = vld [vmem:[#allocation5 + $0x744] ss:$28 sps:$4 sm:$0xff]  }
  0x9c   :  { %v4773_v35 = vld [vmem:[#allocation5 + $0x5b4] ss:$28 sps:$4 sm:$0xff]   ;;  %v4878_v46 = vld [vmem:[#allocation5 + $0x77c] ss:$28 sps:$4 sm:$0xff]   ;;  %s4036_s14 = sshll.u32 %s5567_s6, 4  ;;  %s4037_s14 = int_to_ptr.vmem [resolvable:$true] %s4036_s14 }
  0x9d   :  { %2540 = vmatpush1.bf16.msra.mxu1 %v4792_v45  ;;  %v120_v37 = vld [vmem:[#allocation2 + $0x28] sm:$0xff]  ;;  %v4777_v45 = vld [vmem:[#allocation5 + $0x5e8] ss:$28 sps:$4 sm:$0xff]   ;;  %v4791_v52 = vld [vmem:[#allocation5 + $0x65c] ss:$28 sps:$4 sm:$0xff]   ;;  %s5519_s3 = scalar_lea.vmem %s4037_s14, 128  ;;  %p5524_p1 = scmp.lt.s32.totalorder %s4037_s14, %s4037_s14 }
  0x9e   :  { %2341 = vmatpush1.bf16.msra.mxu0 %v4710_v18  ;;  %2541 = vmatprep.subr.bf16.mxu1 %v4800_v48  ;;  %v4755_v18 = vld [vmem:[#allocation5 + $0x4d4] ss:$28 sps:$4 sm:$0xff]   ;;  %v5709_v43 = vpack.c.bf16 %v120_v37, %v120_v37  ;;  %v4855_v37 = vld [vmem:[#allocation5 + $0x8c0] ss:$28 sps:$4 sm:$0xff]   ;;  %p5520_p0 = scmp.ne.s32.totalorder %s4037_s14, %s5519_s3  ;;  %p5525_p2 = scmp.lt.s32.totalorder %s5519_s3, %s5519_s3 }
  0x9f   :  { %2342 = vmatprep.subr.bf16.mxu0 %v4711_v19  ;;  %v4753_v19 = vld [vmem:[#allocation5 + $0x4d0] ss:$28 sps:$4 sm:$0xff]   ;;  %v4876_v48 = vld [vmem:[#allocation5 + $0x778] ss:$28 sps:$4 sm:$0xff]  }
  0xa0   :  { %v4771_v39 = vld [vmem:[#allocation5 + $0x5b0] ss:$28 sps:$4 sm:$0xff]   ;;  %p5526_p3 = por %p5525_p2, %p5524_p1 }
  0xa1   :  { %2542 = vmatpush1.bf16.msra.mxu1 %v4798_v53  ;;  %v4882_v53 = vld [vmem:[#allocation5 + $0x7b0] ss:$28 sps:$4 sm:$0xff]  }
  0xa2   :  { %2343 = vmatpush1.bf16.msra.mxu0 %v4713_v20  ;;  %2543 = vmatprep.subr.bf16.mxu1 %v4806_v54  ;;  %v4840_v20 = vld [vmem:[#allocation5 + $0x628] ss:$28 sps:$4 sm:$0xff]   ;;  %v4789_v54 = vld [vmem:[#allocation5 + $0x658] ss:$28 sps:$4 sm:$0xff]   ;;  %p5527_p4 = pnand %p5526_p3, %p5520_p0 }
  0xa3   :  { %2344 = vmatprep.subr.bf16.mxu0 %v4714_v21  ;;  %v4848_v21 = vld [vmem:[#allocation5 + $0x664] ss:$28 sps:$4 sm:$0xff]  }
  0xa5   :  { %2544 = vmatpush1.bf16.msra.mxu1 %v4804_v58  ;;  %v4888_v58 = vld [vmem:[#allocation5 + $0x7e8] ss:$28 sps:$4 sm:$0xff]  }
  0xa6   :  { %2345 = vmatpush1.bf16.msra.mxu0 %v4716_v22  ;;  %2545 = vmatprep.subr.bf16.mxu1 %v4812_v60  ;;  %v4758_v22 = vld [vmem:[#allocation5 + $0x50c] ss:$28 sps:$4 sm:$0xff]   ;;  %v4896_v60 = vld [vmem:[#allocation5 + $0x824] ss:$28 sps:$4 sm:$0xff]  }
  0xa7   :  { %2346 = vmatprep.subr.bf16.mxu0 %v4717_v25  ;;  %v4854_v25 = vld [vmem:[#allocation5 + $0x69c] ss:$28 sps:$4 sm:$0xff]  }
  0xa9   :  { %2546 = vmatpush1.bf16.msra.mxu1 %v4810_v62  ;;  %v4894_v62 = vld [vmem:[#allocation5 + $0x820] ss:$28 sps:$4 sm:$0xff]  }
  0xaa   :  { %2347 = vmatpush1.bf16.msra.mxu0 %v4719_v29  ;;  %2547 = vmatprep.subr.bf16.mxu1 %v4818_v63  ;;  %v4860_v29 = vld [vmem:[#allocation5 + $0x6d4] ss:$28 sps:$4 sm:$0xff]   ;;  %v4801_v63 = vld [vmem:[#allocation5 + $0x6c8] ss:$28 sps:$4 sm:$0xff]  }
  0xab   :  { %2348 = vmatprep.subr.bf16.mxu0 %v4720_v31  ;;  %v4767_v31 = vld [vmem:[#allocation5 + $0x57c] ss:$28 sps:$4 sm:$0xff]  }
  0xad   :  { %2548 = vmatpush1.bf16.msra.mxu1 %v4816_v3  ;;  %v4900_v3 = vld [vmem:[#allocation5 + $0x858] ss:$28 sps:$4 sm:$0xff]  }
  0xae   :  { %2349 = vmatpush1.bf16.msra.mxu0 %v4722_v34  ;;  %2549 = vmatprep.subr.bf16.mxu1 %v4824_v4  ;;  %v4866_v34 = vld [vmem:[#allocation5 + $0x70c] ss:$28 sps:$4 sm:$0xff]   ;;  %v4807_v4 = vld [vmem:[#allocation5 + $0x700] ss:$28 sps:$4 sm:$0xff]  }
  0xaf   :  { %2350 = vmatprep.subr.bf16.mxu0 %v4723_v36  ;;  %v117_v36 = vld [vmem:[#allocation2 + $0x10] sm:$0xff] }
  0xb1   :  { %2550 = vmatpush1.bf16.msra.mxu1 %v4822_v7  ;;  %v4906_v7 = vld [vmem:[#allocation5 + $0x890] ss:$28 sps:$4 sm:$0xff]  }
  0xb2   :  { %2351 = vmatpush1.bf16.msra.mxu0 %v4725_v38  ;;  %2551 = vmatprep.subr.bf16.mxu1 %v4830_v8  ;;  %v4864_v38 = vld [vmem:[#allocation5 + $0x708] ss:$28 sps:$4 sm:$0xff]   ;;  %v4813_v8 = vld [vmem:[#allocation5 + $0x738] ss:$28 sps:$4 sm:$0xff]  }
  0xb3   :  { %2352 = vmatprep.subr.bf16.mxu0 %v4726_v40  ;;  %v5707_v40 = vpack.c.bf16 %v117_v36, %v117_v36  ;;  %v4857_v36 = vld [vmem:[#allocation5 + $0x8c4] ss:$28 sps:$4 sm:$0xff]  }
  0xb5   :  { %2552 = vmatpush1.bf16.msra.mxu1 %v4828_v11  ;;  %v4819_v11 = vld [vmem:[#allocation5 + $0x770] ss:$28 sps:$4 sm:$0xff]  }
  0xb6   :  { %2353 = vmatpush1.bf16.msra.mxu0 %v4728_v42  ;;  %2553 = vmatprep.subr.bf16.mxu1 %v4836_v12  ;;  %v4779_v42 = vld [vmem:[#allocation5 + $0x5ec] ss:$28 sps:$4 sm:$0xff]  }
  0xb7   :  { %2354 = vmatprep.subr.bf16.mxu0 %v4729_v44  ;;  %v4870_v44 = vld [vmem:[#allocation5 + $0x740] ss:$28 sps:$4 sm:$0xff]   ;;  %v4912_v12 = vld [vmem:[#allocation5 + $0x8c8] ss:$28 sps:$4 sm:$0xff]  }
  0xb9   :  { %2554 = vmatpush1.bf16.msra.mxu1 %v4834_v16  ;;  %v4825_v16 = vld [vmem:[#allocation5 + $0x7a8] ss:$28 sps:$4 sm:$0xff]  }
  0xba   :  { %2355 = vmatpush1.bf16.msra.mxu0 %v4731_v47  ;;  %2555 = vmatprep.subr.bf16.mxu1 %v4842_v17  ;;  %v4785_v47 = vld [vmem:[#allocation5 + $0x624] ss:$28 sps:$4 sm:$0xff]  }
  0xbb   :  { %2356 = vmatprep.subr.bf16.mxu0 %v4732_v50  ;;  %v4783_v50 = vld [vmem:[#allocation5 + $0x620] ss:$28 sps:$4 sm:$0xff]  }
  0xbc   :  { %v4918_v17 = vld [vmem:[#allocation5 + $0x900] ss:$28 sps:$4 sm:$0xff]  }
  0xbd   :  { %2556 = vmatpush1.bf16.msra.mxu1 %v4840_v20  ;;  %v4924_v20 = vld [vmem:[#allocation5 + $0x938] ss:$28 sps:$4 sm:$0xff]  }
  0xbe   :  { %2357 = vmatpush1.bf16.msra.mxu0 %v4734_v51  ;;  %2557 = vmatprep.subr.bf16.mxu1 %v4848_v21  ;;  %v4884_v51 = vld [vmem:[#allocation5 + $0x7b4] ss:$28 sps:$4 sm:$0xff]   ;;  %v4831_v21 = vld [vmem:[#allocation5 + $0x7e0] ss:$28 sps:$4 sm:$0xff]  }
  0xbf   :  { %2367 = vmatprep.subr.bf16.mxu0 %v4737_v55  ;;  %v4890_v55 = vld [vmem:[#allocation5 + $0x7ec] ss:$28 sps:$4 sm:$0xff]  }
  0xc1   :  { %2359 = vmatmul.mubr.bf16.vlgmr.msra.gmra.mrb[0].mxu0 %v5703_v57  ;;  %2558 = vmatpush1.bf16.msra.mxu1 %v4846_v24  ;;  %v4837_v24 = vld [vmem:[#allocation5 + $0x818] ss:$28 sps:$4 sm:$0xff]  }
  0xc2   :  { %2368 = vmatpush1.bf16.msra.mxu0 %v4735_v56  ;;  %2399 = vmatprep.mubr.bf16.mxu0 %v5700_v49  ;;  %v4797_v56 = vld [vmem:[#allocation5 + $0x694] ss:$28 sps:$4 sm:$0xff]  }
  0xc3   :  { %2369 = vmatprep.subr.bf16.mxu0 %v4740_v59  ;;  %2559 = vmatprep.subr.bf16.mxu1 %v4854_v25  ;;  %v4795_v59 = vld [vmem:[#allocation5 + $0x690] ss:$28 sps:$4 sm:$0xff]  }
  0xc4   :  { %v4930_v25 = vld [vmem:[#allocation5 + $0x970] ss:$28 sps:$4 sm:$0xff]  }
  0xc5   :  { %2560 = vmatpush1.bf16.msra.mxu1 %v4852_v28  ;;  %v4843_v28 = vld [vmem:[#allocation5 + $0x850] ss:$28 sps:$4 sm:$0xff]  }
  0xc6   :  { %2370 = vmatpush1.bf16.msra.mxu0 %v4738_v61  ;;  %2561 = vmatprep.subr.bf16.mxu1 %v4860_v29  ;;  %v4803_v61 = vld [vmem:[#allocation5 + $0x6cc] ss:$28 sps:$4 sm:$0xff]  }
  0xc7   :  { %2371 = vmatprep.subr.bf16.mxu0 %v4743_v1  ;;  %v4902_v1 = vld [vmem:[#allocation5 + $0x85c] ss:$28 sps:$4 sm:$0xff]   ;;  %v4936_v29 = vld [vmem:[#allocation5 + $0x9a8] ss:$28 sps:$4 sm:$0xff]  }
  0xc9   :  { %2562 = vmatpush1.bf16.msra.mxu1 %v4858_v32  ;;  %v4851_v32 = vld [vmem:[#allocation5 + $0x88c] ss:$28 sps:$4 sm:$0xff]  }
  0xca   :  { %2372 = vmatpush1.bf16.msra.mxu0 %v4741_v2  ;;  %2572 = vmatprep.subr.bf16.mxu1 %v4866_v34  ;;  %v4809_v2 = vld [vmem:[#allocation5 + $0x704] ss:$28 sps:$4 sm:$0xff]  }
  0xcb   :  { %2373 = vmatprep.subr.bf16.mxu0 %v4746_v5  ;;  %v4815_v5 = vld [vmem:[#allocation5 + $0x73c] ss:$28 sps:$4 sm:$0xff]  }
  0xcc   :  { %2564 = vmatmul.mubr.bf16.vlgmr.msra.gmra.mrb[4].mxu1 %v5707_v40  ;;  %v4942_v34 = vld [vmem:[#allocation5 + $0x9e0] ss:$28 sps:$4 sm:$0xff]  }
  0xcd   :  { %2573 = vmatpush1.bf16.msra.mxu1 %v4864_v38  ;;  %2604 = vmatprep.mubr.bf16.mxu1 %v5709_v43  ;;  %v4948_v38 = vld [vmem:[#allocation5 + $0xa18] ss:$28 sps:$4 sm:$0xff]  }
  0xce   :  { %2374 = vmatpush1.bf16.msra.mxu0 %v4744_v6  ;;  %2574 = vmatprep.subr.bf16.mxu1 %v4872_v41  ;;  %v4908_v6 = vld [vmem:[#allocation5 + $0x894] ss:$28 sps:$4 sm:$0xff]   ;;  %v4863_v41 = vld [vmem:[#allocation5 + $0x8fc] ss:$28 sps:$4 sm:$0xff]  }
  0xcf   :  { %2375 = vmatprep.subr.bf16.mxu0 %v4749_v9  ;;  %v4914_v9 = vld [vmem:[#allocation5 + $0x8cc] ss:$28 sps:$4 sm:$0xff]  }
  0xd1   :  { %2575 = vmatpush1.bf16.msra.mxu1 %v4870_v44  ;;  %v4954_v44 = vld [vmem:[#allocation5 + $0xa50] ss:$28 sps:$4 sm:$0xff]  }
  0xd2   :  { %2376 = vmatpush1.bf16.msra.mxu0 %v4747_v10  ;;  %2576 = vmatprep.subr.bf16.mxu1 %v4878_v46  ;;  %v4821_v10 = vld [vmem:[#allocation5 + $0x774] ss:$28 sps:$4 sm:$0xff]   ;;  %v4968_v46 = vld [vmem:[#allocation5 + $0xa8c] ss:$28 sps:$4 sm:$0xff]  }
  0xd3   :  { %2377 = vmatprep.subr.bf16.mxu0 %v4752_v13  ;;  %v4920_v13 = vld [vmem:[#allocation5 + $0x904] ss:$28 sps:$4 sm:$0xff]  }
  0xd5   :  { %2577 = vmatpush1.bf16.msra.mxu1 %v4876_v48  ;;  %v4867_v48 = vld [vmem:[#allocation5 + $0x930] ss:$28 sps:$4 sm:$0xff]  }
  0xd6   :  { %2378 = vmatpush1.bf16.msra.mxu0 %v4750_v14  ;;  %2578 = vmatprep.subr.bf16.mxu1 %v4884_v51  ;;  %v4827_v14 = vld [vmem:[#allocation5 + $0x7ac] ss:$28 sps:$4 sm:$0xff]  }
  0xd7   :  { %2379 = vmatprep.subr.bf16.mxu0 %v4755_v18  ;;  %v4926_v18 = vld [vmem:[#allocation5 + $0x93c] ss:$28 sps:$4 sm:$0xff]  }
  0xd9   :  { %2579 = vmatpush1.bf16.msra.mxu1 %v4882_v53  ;;  %v4875_v53 = vld [vmem:[#allocation5 + $0x96c] ss:$28 sps:$4 sm:$0xff]  }
  0xda   :  { %2380 = vmatpush1.bf16.msra.mxu0 %v4753_v19  ;;  %2580 = vmatprep.subr.bf16.mxu1 %v4890_v55  ;;  %v4833_v19 = vld [vmem:[#allocation5 + $0x7e4] ss:$28 sps:$4 sm:$0xff]  }
  0xdb   :  { %2381 = vmatprep.subr.bf16.mxu0 %v4758_v22  ;;  %v4932_v22 = vld [vmem:[#allocation5 + $0x974] ss:$28 sps:$4 sm:$0xff]   ;;  %v4881_v55 = vld [vmem:[#allocation5 + $0x9a4] ss:$28 sps:$4 sm:$0xff]  }
  0xdd   :  { %2581 = vmatpush1.bf16.msra.mxu1 %v4888_v58  ;;  %v4887_v58 = vld [vmem:[#allocation5 + $0x9dc] ss:$28 sps:$4 sm:$0xff]  }
  0xde   :  { %2382 = vmatpush1.bf16.msra.mxu0 %v4756_v23  ;;  %2582 = vmatprep.subr.bf16.mxu1 %v4896_v60  ;;  %v4839_v23 = vld [vmem:[#allocation5 + $0x81c] ss:$28 sps:$4 sm:$0xff]   ;;  %v4972_v60 = vld [vmem:[#allocation5 + $0xa90] ss:$28 sps:$4 sm:$0xff]  }
  0xdf   :  { %2383 = vmatprep.subr.bf16.mxu0 %v4761_v26  ;;  %v4938_v26 = vld [vmem:[#allocation5 + $0x9ac] ss:$28 sps:$4 sm:$0xff]  }
  0xe1   :  { %2583 = vmatpush1.bf16.msra.mxu1 %v4894_v62  ;;  %v4893_v62 = vld [vmem:[#allocation5 + $0xa14] ss:$28 sps:$4 sm:$0xff]  }
  0xe2   :  { %2384 = vmatpush1.bf16.msra.mxu0 %v4759_v27  ;;  %2584 = vmatprep.subr.bf16.mxu1 %v4902_v1  ;;  %v4845_v27 = vld [vmem:[#allocation5 + $0x854] ss:$28 sps:$4 sm:$0xff]   ;;  %v4899_v1 = vld [vmem:[#allocation5 + $0xa4c] ss:$28 sps:$4 sm:$0xff]  }
  0xe3   :  { %2385 = vmatprep.subr.bf16.mxu0 %v4767_v31  ;;  %v4944_v31 = vld [vmem:[#allocation5 + $0x9e4] ss:$28 sps:$4 sm:$0xff]  }
  0xe5   :  { %2585 = vmatpush1.bf16.msra.mxu1 %v4900_v3  ;;  %v4982_v3 = vld [vmem:[#allocation5 + $0x18] ss:$28 sps:$4 sm:$0xff]  }
  0xe6   :  { %2386 = vmatpush1.bf16.msra.mxu0 %v4765_v33  ;;  %2586 = vmatprep.subr.bf16.mxu1 %v4908_v6  ;;  %v4849_v33 = vld [vmem:[#allocation5 + $0x888] ss:$28 sps:$4 sm:$0xff]  }
  0xe7   :  { %2387 = vmatprep.subr.bf16.mxu0 %v4773_v35  ;;  %v4950_v35 = vld [vmem:[#allocation5 + $0xa1c] ss:$28 sps:$4 sm:$0xff]   ;;  %v4903_v6 = vld [vmem:[#allocation5 + $0x8] ss:$28 sps:$4 sm:$0xff]  }
  0xe9   :  { %2587 = vmatpush1.bf16.msra.mxu1 %v4906_v7  ;;  %v4987_v7 = vld [vmem:[#allocation5 + $0x50] ss:$28 sps:$4 sm:$0xff]  }
  0xea   :  { %2388 = vmatpush1.bf16.msra.mxu0 %v4771_v39  ;;  %2588 = vmatprep.subr.bf16.mxu1 %v4914_v9  ;;  %v4956_v39 = vld [vmem:[#allocation5 + $0xa54] ss:$28 sps:$4 sm:$0xff]   ;;  %v4988_v9 = vld [vmem:[#allocation5 + $0x248] ss:$28 sps:$4 sm:$0xff]  }
  0xeb   :  { %2389 = vmatprep.subr.bf16.mxu0 %v4779_v42  ;;  %v4861_v42 = vld [vmem:[#allocation5 + $0x8f8] ss:$28 sps:$4 sm:$0xff]  }
  0xed   :  { %2589 = vmatpush1.bf16.msra.mxu1 %v4912_v12  ;;  %v4993_v12 = vld [vmem:[#allocation5 + $0x280] ss:$28 sps:$4 sm:$0xff]  }
  0xee   :  { %2390 = vmatpush1.bf16.msra.mxu0 %v4777_v45  ;;  %2590 = vmatprep.subr.bf16.mxu1 %v4920_v13  ;;  %v4869_v45 = vld [vmem:[#allocation5 + $0x934] ss:$28 sps:$4 sm:$0xff]   ;;  %v4917_v13 = vld [vmem:[#allocation5 + $0x7c] ss:$28 sps:$4 sm:$0xff]  }
  0xef   :  { %2391 = vmatprep.subr.bf16.mxu0 %v4785_v47  ;;  %v119_v47 = vld [vmem:[#allocation2 + $0x20] sm:$0xff] }
  0xf0   :  { %v5715_v51 = vpack.c.bf16 %v119_v47, %v119_v47  ;;  %v4957_v47 = vld [vmem:[#allocation5 + $0x200] ss:$28 sps:$4 sm:$0xff]  }
  0xf1   :  { %2591 = vmatpush1.bf16.msra.mxu1 %v4918_v17  ;;  %v4998_v17 = vld [vmem:[#allocation5 + $0x2b8] ss:$28 sps:$4 sm:$0xff]  }
  0xf2   :  { %2392 = vmatpush1.bf16.msra.mxu0 %v4783_v50  ;;  %2592 = vmatprep.subr.bf16.mxu1 %v4926_v18  ;;  %v4966_v50 = vld [vmem:[#allocation5 + $0xa88] ss:$28 sps:$4 sm:$0xff]   ;;  %v4923_v18 = vld [vmem:[#allocation5 + $0xb4] ss:$28 sps:$4 sm:$0xff]  }
  0xf3   :  { %2393 = vmatprep.subr.bf16.mxu0 %v4791_v52  ;;  %v4974_v52 = vld [vmem:[#allocation5 + $0xa94] ss:$28 sps:$4 sm:$0xff]  }
  0xf5   :  { %2593 = vmatpush1.bf16.msra.mxu1 %v4924_v20  ;;  %v4921_v20 = vld [vmem:[#allocation5 + $0xb0] ss:$28 sps:$4 sm:$0xff]  }
  0xf6   :  { %2394 = vmatpush1.bf16.msra.mxu0 %v4789_v54  ;;  %2594 = vmatprep.subr.bf16.mxu1 %v4932_v22  ;;  %v4873_v54 = vld [vmem:[#allocation5 + $0x968] ss:$28 sps:$4 sm:$0xff]   ;;  %v5003_v22 = vld [vmem:[#allocation5 + $0x2f0] ss:$28 sps:$4 sm:$0xff]  }
  0xf7   :  { %2395 = vmatprep.subr.bf16.mxu0 %v4797_v56  ;;  %v4879_v56 = vld [vmem:[#allocation5 + $0x9a0] ss:$28 sps:$4 sm:$0xff]  }
  0xf9   :  { %2595 = vmatpush1.bf16.msra.mxu1 %v4930_v25  ;;  %v4935_v25 = vld [vmem:[#allocation5 + $0x124] ss:$28 sps:$4 sm:$0xff]  }
  0xfa   :  { %2396 = vmatpush1.bf16.msra.mxu0 %v4795_v59  ;;  %2596 = vmatprep.subr.bf16.mxu1 %v4938_v26  ;;  %v4885_v59 = vld [vmem:[#allocation5 + $0x9d8] ss:$28 sps:$4 sm:$0xff]   ;;  %v5008_v26 = vld [vmem:[#allocation5 + $0x328] ss:$28 sps:$4 sm:$0xff]  }
  0xfb   :  { %2397 = vmatprep.subr.bf16.mxu0 %v4803_v61  ;;  %v4978_v61 = vld [vmem:[#allocation5 + $0x1d8] ss:$28 sps:$4 sm:$0xff]  }
  0xfd   :  { %2597 = vmatpush1.bf16.msra.mxu1 %v4936_v29  ;;  %v4941_v29 = vld [vmem:[#allocation5 + $0x15c] ss:$28 sps:$4 sm:$0xff]  }
  0xfe   :  { %2398 = vmatpush1.bf16.msra.mxu0 %v4801_v63  ;;  %2598 = vmatprep.subr.bf16.mxu1 %v4944_v31  ;;  %v4891_v63 = vld [vmem:[#allocation5 + $0xa10] ss:$28 sps:$4 sm:$0xff]   ;;  %v5013_v31 = vld [vmem:[#allocation5 + $0x360] ss:$28 sps:$4 sm:$0xff]  }
  0xff   :  { %2408 = vmatprep.subr.bf16.mxu0 %v4809_v2  ;;  %v4897_v2 = vld [vmem:[#allocation5 + $0xa48] ss:$28 sps:$4 sm:$0xff]  }
 0x101   :  { %2400 = vmatmul.mubr.bf16.vlgmr.msra.gmra.mrb[0].mxu0 %v5707_v40  ;;  %2599 = vmatpush1.bf16.msra.mxu1 %v4942_v34  ;;  %v4947_v34 = vld [vmem:[#allocation5 + $0x194] ss:$28 sps:$4 sm:$0xff]  }
 0x102   :  { %2409 = vmatpush1.bf16.msra.mxu0 %v4807_v4  ;;  %2440 = vmatprep.mubr.bf16.mxu0 %v5709_v43  ;;  %v4983_v4 = vld [vmem:[#allocation5 + $0x210] ss:$28 sps:$4 sm:$0xff]  }
 0x103   :  { %2410 = vmatprep.subr.bf16.mxu0 %v4815_v5  ;;  %2600 = vmatprep.subr.bf16.mxu1 %v4950_v35  ;;  %v4905_v5 = vld [vmem:[#allocation5 + $0xc] ss:$28 sps:$4 sm:$0xff]   ;;  %v5018_v35 = vld [vmem:[#allocation5 + $0x558] ss:$28 sps:$4 sm:$0xff]  }
 0x105   :  { %2601 = vmatpush1.bf16.msra.mxu1 %v4948_v38  ;;  %v5023_v38 = vld [vmem:[#allocation5 + $0x590] ss:$28 sps:$4 sm:$0xff]  }
 0x106   :  { %2411 = vmatpush1.bf16.msra.mxu0 %v4813_v8  ;;  %2602 = vmatprep.subr.bf16.mxu1 %v4956_v39  ;;  %v4911_v8 = vld [vmem:[#allocation5 + $0x44] ss:$28 sps:$4 sm:$0xff]   ;;  %v4953_v39 = vld [vmem:[#allocation5 + $0x1cc] ss:$28 sps:$4 sm:$0xff]  }
 0x107   :  { %2412 = vmatprep.subr.bf16.mxu0 %v4821_v10  ;;  %v4909_v10 = vld [vmem:[#allocation5 + $0x40] ss:$28 sps:$4 sm:$0xff]  }
 0x109   :  { %2603 = vmatpush1.bf16.msra.mxu1 %v4954_v44  ;;  %v5028_v44 = vld [vmem:[#allocation5 + $0x5c8] ss:$28 sps:$4 sm:$0xff]  }
 0x10a   :  { %2413 = vmatpush1.bf16.msra.mxu0 %v4819_v11  ;;  %2613 = vmatprep.subr.bf16.mxu1 %v4968_v46  ;;  %v4992_v11 = vld [vmem:[#allocation5 + $0x88] ss:$28 sps:$4 sm:$0xff]  }
 0x10b   :  { %2414 = vmatprep.subr.bf16.mxu0 %v4827_v14  ;;  %v4915_v14 = vld [vmem:[#allocation5 + $0x78] ss:$28 sps:$4 sm:$0xff]   ;;  %v5032_v46 = vld [vmem:[#allocation5 + $0x408] ss:$28 sps:$4 sm:$0xff]  }
 0x10c   :  { %2605 = vmatmul.mubr.bf16.vlgmr.msra.gmra.mrb[4].mxu1 %v5715_v51 }
 0x10d   :  { %2614 = vmatpush1.bf16.msra.mxu1 %v4966_v50  ;;  %2645 = vmatprep.mubr.bf16.mxu1 %v5564_v0  ;;  %v5033_v50 = vld [vmem:[#allocation5 + $0x600] ss:$28 sps:$4 sm:$0xff]  }
 0x10e   :  { %2415 = vmatpush1.bf16.msra.mxu0 %v4825_v16  ;;  %2777 = vmatprep.subr.bf16.mxu1 %v4974_v52  ;;  %v4997_v16 = vld [vmem:[#allocation5 + $0xc0] ss:$28 sps:$4 sm:$0xff]  }
 0x10f   :  { %2416 = vmatprep.subr.bf16.mxu0 %v4833_v19  ;;  %v5002_v19 = vld [vmem:[#allocation5 + $0xf8] ss:$28 sps:$4 sm:$0xff]   ;;  %v5037_v52 = vld [vmem:[#allocation5 + $0x440] ss:$28 sps:$4 sm:$0xff]  }
 0x112   :  { %2417 = vmatpush1.bf16.msra.mxu0 %v4831_v21  ;;  %v4929_v21 = vld [vmem:[#allocation5 + $0xec] ss:$28 sps:$4 sm:$0xff]  }
 0x113   :  { %2418 = vmatprep.subr.bf16.mxu0 %v4839_v23  ;;  %v5007_v23 = vld [vmem:[#allocation5 + $0x130] ss:$28 sps:$4 sm:$0xff]  }
 0x116   :  { %2419 = vmatpush1.bf16.msra.mxu0 %v4837_v24  ;;  %v4927_v24 = vld [vmem:[#allocation5 + $0xe8] ss:$28 sps:$4 sm:$0xff]  }
 0x117   :  { %2420 = vmatprep.subr.bf16.mxu0 %v4845_v27  ;;  %v5012_v27 = vld [vmem:[#allocation5 + $0x168] ss:$28 sps:$4 sm:$0xff]  }
 0x118   :  { %4392 = vmatmul.mubr.msk.bf16.vlgmr.msra.gmra.mrb[4].mxu1 %vm2322_vm0, %v5696_v30 }
 0x119   :  { %2778 = vmatpush1.bf16.msra.mxu1 %v4972_v60  ;;  %2809 = vmatprep.mubr.bf16.mxu1 %v5564_v0  ;;  %v5043_v60 = vld [vmem:[#allocation5 + $0x670] ss:$28 sps:$4 sm:$0xff]  }
 0x11a   :  { %2421 = vmatpush1.bf16.msra.mxu0 %v4843_v28  ;;  %4524 = vmatprep.subr.bf16.mxu1 %v4978_v61  ;;  %v4933_v28 = vld [vmem:[#allocation5 + $0x120] ss:$28 sps:$4 sm:$0xff]   ;;  %v5047_v61 = vld [vmem:[#allocation5 + $0x4b0] ss:$28 sps:$4 sm:$0xff]  }
 0x11b   :  { %2422 = vmatprep.subr.bf16.mxu0 %v4851_v32  ;;  %v5017_v32 = vld [vmem:[#allocation5 + $0x1a0] ss:$28 sps:$4 sm:$0xff]  }
 0x11e   :  { %2423 = vmatpush1.bf16.msra.mxu0 %v4849_v33  ;;  %v4939_v33 = vld [vmem:[#allocation5 + $0x158] ss:$28 sps:$4 sm:$0xff]  }
 0x11f   :  { %2424 = vmatprep.subr.bf16.mxu0 %v4857_v36  ;;  %v5022_v36 = vld [vmem:[#allocation5 + $0x398] ss:$28 sps:$4 sm:$0xff]  }
 0x120   :  { %4393 = vmatmul.mubr.msk.bf16.vlgmr.msra.gmra.mrb[8].mxu1 %vm2322_vm0, %v5696_v30 }
 0x121   :  { %4525 = vmatpush3.bf16.msra.mxu1 %v4982_v3  ;;  %2850 = vmatprep.mubr.bf16.mxu1 %v5693_v15  ;;  %v4975_v3 = vld [vmem:[#allocation5 + $0x2e0] ss:$28 sps:$4 sm:$0xff]  }
 0x122   :  { %2425 = vmatpush1.bf16.msra.mxu0 %v4855_v37  ;;  %4526 = vmatprep.subr.bf16.mxu1 %v4983_v4  ;;  %v4945_v37 = vld [vmem:[#allocation5 + $0x190] ss:$28 sps:$4 sm:$0xff]   ;;  %v4981_v4 = vld [vmem:[#allocation5 + $0x31c] ss:$28 sps:$4 sm:$0xff]  }
 0x123   :  { %2426 = vmatprep.subr.bf16.mxu0 %v4863_v41  ;;  %v5027_v41 = vld [vmem:[#allocation5 + $0x3d0] ss:$28 sps:$4 sm:$0xff]  }
 0x125   :  { %4527 = vmatpush3.bf16.msra.mxu1 %v4987_v7  ;;  %v4979_v7 = vld [vmem:[#allocation5 + $0x318] ss:$28 sps:$4 sm:$0xff]  }
 0x126   :  { %2427 = vmatpush1.bf16.msra.mxu0 %v4861_v42  ;;  %4528 = vmatprep.subr.bf16.mxu1 %v4988_v9  ;;  %v4951_v42 = vld [vmem:[#allocation5 + $0x1c8] ss:$28 sps:$4 sm:$0xff]   ;;  %v5058_v9 = vld [vmem:[#allocation5 + $0x8d8] ss:$28 sps:$4 sm:$0xff]  }
 0x127   :  { %2428 = vmatprep.subr.bf16.mxu0 %v4869_v45  ;;  %v4959_v45 = vld [vmem:[#allocation5 + $0x204] ss:$28 sps:$4 sm:$0xff]  }
 0x129   :  { %4529 = vmatpush3.bf16.msra.mxu1 %v4992_v11  ;;  %v4984_v11 = vld [vmem:[#allocation5 + $0x350] ss:$28 sps:$4 sm:$0xff]  }
 0x12a   :  { %2429 = vmatpush1.bf16.msra.mxu0 %v4867_v48  ;;  %4530 = vmatprep.subr.bf16.mxu1 %v4993_v12  ;;  %v4962_v48 = vld [vmem:[#allocation5 + $0x23c] ss:$28 sps:$4 sm:$0xff]   ;;  %v4991_v12 = vld [vmem:[#allocation5 + $0x14] ss:$28 sps:$4 sm:$0xff]  }
 0x12b   :  { %2430 = vmatprep.subr.bf16.mxu0 %v4875_v53  ;;  %v4960_v53 = vld [vmem:[#allocation5 + $0x238] ss:$28 sps:$4 sm:$0xff]  }
 0x12d   :  { %4531 = vmatpush3.bf16.msra.mxu1 %v4997_v16  ;;  %v4989_v16 = vld [vmem:[#allocation5 + $0x10] ss:$28 sps:$4 sm:$0xff]  }
 0x12e   :  { %2431 = vmatpush1.bf16.msra.mxu0 %v4873_v54  ;;  %4532 = vmatprep.subr.bf16.mxu1 %v4998_v17  ;;  %v4965_v54 = vld [vmem:[#allocation5 + $0x274] ss:$28 sps:$4 sm:$0xff]   ;;  %v4996_v17 = vld [vmem:[#allocation5 + $0x4c] ss:$28 sps:$4 sm:$0xff]  }
 0x12f   :  { %2432 = vmatprep.subr.bf16.mxu0 %v4881_v55  ;;  %v5038_v55 = vld [vmem:[#allocation5 + $0x638] ss:$28 sps:$4 sm:$0xff]  }
 0x131   :  { %4533 = vmatpush3.bf16.msra.mxu1 %v5002_v19  ;;  %v5072_v19 = vld [vmem:[#allocation5 + $0x788] ss:$28 sps:$4 sm:$0xff]  }
 0x132   :  { %2433 = vmatpush1.bf16.msra.mxu0 %v4879_v56  ;;  %4534 = vmatprep.subr.bf16.mxu1 %v5003_v22  ;;  %v5042_v56 = vld [vmem:[#allocation5 + $0x478] ss:$28 sps:$4 sm:$0xff]   ;;  %v5073_v22 = vld [vmem:[#allocation5 + $0x980] ss:$28 sps:$4 sm:$0xff]  }
 0x133   :  { %2434 = vmatprep.subr.bf16.mxu0 %v4887_v58  ;;  %v4963_v58 = vld [vmem:[#allocation5 + $0x270] ss:$28 sps:$4 sm:$0xff]  }
 0x135   :  { %4535 = vmatpush3.bf16.msra.mxu1 %v5007_v23  ;;  %v5077_v23 = vld [vmem:[#allocation5 + $0x7c0] ss:$28 sps:$4 sm:$0xff]  }
 0x136   :  { %2435 = vmatpush1.bf16.msra.mxu0 %v4885_v59  ;;  %4536 = vmatprep.subr.bf16.mxu1 %v5008_v26  ;;  %v4971_v59 = vld [vmem:[#allocation5 + $0x2ac] ss:$28 sps:$4 sm:$0xff]   ;;  %v5078_v26 = vld [vmem:[#allocation5 + $0x9b8] ss:$28 sps:$4 sm:$0xff]  }
 0x137   :  { %2436 = vmatprep.subr.bf16.mxu0 %v4893_v62  ;;  %v4969_v62 = vld [vmem:[#allocation5 + $0x2a8] ss:$28 sps:$4 sm:$0xff]  }
 0x139   :  { %4537 = vmatpush3.bf16.msra.mxu1 %v5012_v27  ;;  %v5082_v27 = vld [vmem:[#allocation5 + $0x7f8] ss:$28 sps:$4 sm:$0xff]  }
 0x13a   :  { %2437 = vmatpush1.bf16.msra.mxu0 %v4891_v63  ;;  %4538 = vmatprep.subr.bf16.mxu1 %v5013_v31  ;;  %v4977_v63 = vld [vmem:[#allocation5 + $0x2e4] ss:$28 sps:$4 sm:$0xff]   ;;  %v5083_v31 = vld [vmem:[#allocation5 + $0x9f0] ss:$28 sps:$4 sm:$0xff]  }
 0x13b   :  { %2438 = vmatprep.subr.bf16.mxu0 %v4899_v1  ;;  %v5048_v1 = vld [vmem:[#allocation5 + $0x6a8] ss:$28 sps:$4 sm:$0xff]  }
 0x13d   :  { %4539 = vmatpush3.bf16.msra.mxu1 %v5017_v32  ;;  %v5087_v32 = vld [vmem:[#allocation5 + $0x830] ss:$28 sps:$4 sm:$0xff]  }
 0x13e   :  { %2439 = vmatpush1.bf16.msra.mxu0 %v4897_v2  ;;  %4546 = vmatprep.subr.bf16.mxu1 %v5018_v35  ;;  %v5052_v2 = vld [vmem:[#allocation5 + $0x4e8] ss:$28 sps:$4 sm:$0xff]  }
 0x13f   :  { %2490 = vmatprep.subr.bf16.mxu0 %v4905_v5  ;;  %v5053_v5 = vld [vmem:[#allocation5 + $0x6e0] ss:$28 sps:$4 sm:$0xff]   ;;  %v5092_v35 = vld [vmem:[#allocation5 + $0x868] ss:$28 sps:$4 sm:$0xff]  }
 0x140   :  { %2851 = vmatmul.mubr.bf16.vlgmr.msra.gmra.mrb[12].mxu1 %v5703_v57 }
 0x141   :  { %2441 = vmatmul.mubr.bf16.vlgmr.msra.gmra.mrb[0].mxu0 %v5715_v51  ;;  %4547 = vmatpush3.bf16.msra.mxu1 %v5022_v36  ;;  %v5014_v36 = vld [vmem:[#allocation5 + $0x128] ss:$28 sps:$4 sm:$0xff]  }
 0x142   :  { %2491 = vmatpush1.bf16.msra.mxu0 %v4903_v6  ;;  %2522 = vmatprep.mubr.bf16.mxu0 %v5693_v15  ;;  %v5057_v6 = vld [vmem:[#allocation5 + $0x520] ss:$28 sps:$4 sm:$0xff]  }
 0x143   :  { %2492 = vmatprep.subr.bf16.mxu0 %v4911_v8  ;;  %2890 = vmatprep.mubr.bf16.mxu1 %v5700_v49  ;;  %v4986_v8 = vld [vmem:[#allocation5 + $0x354] ss:$28 sps:$4 sm:$0xff]  }
 0x144   :  { %4548 = vmatprep.subr.bf16.mxu1 %v5023_v38  ;;  %v5021_v38 = vld [vmem:[#allocation5 + $0x164] ss:$28 sps:$4 sm:$0xff]  }
 0x145   :  { %4549 = vmatpush3.bf16.msra.mxu1 %v5027_v41  ;;  %v5019_v41 = vld [vmem:[#allocation5 + $0x160] ss:$28 sps:$4 sm:$0xff]  }
 0x146   :  { %2493 = vmatpush1.bf16.msra.mxu0 %v4909_v10  ;;  %4550 = vmatprep.subr.bf16.mxu1 %v5028_v44  ;;  %v5062_v10 = vld [vmem:[#allocation5 + $0x718] ss:$28 sps:$4 sm:$0xff]  }
 0x147   :  { %2494 = vmatprep.subr.bf16.mxu0 %v4917_v13  ;;  %v5063_v13 = vld [vmem:[#allocation5 + $0x910] ss:$28 sps:$4 sm:$0xff]   ;;  %v5026_v44 = vld [vmem:[#allocation5 + $0x19c] ss:$28 sps:$4 sm:$0xff]  }
 0x149   :  { %4551 = vmatpush3.bf16.msra.mxu1 %v5032_v46  ;;  %v5024_v46 = vld [vmem:[#allocation5 + $0x198] ss:$28 sps:$4 sm:$0xff]  }
 0x14a   :  { %2495 = vmatpush1.bf16.msra.mxu0 %v4915_v14  ;;  %4552 = vmatprep.subr.bf16.mxu1 %v5033_v50  ;;  %v5067_v14 = vld [vmem:[#allocation5 + $0x750] ss:$28 sps:$4 sm:$0xff]  }
 0x14b   :  { %2496 = vmatprep.subr.bf16.mxu0 %v4923_v18  ;;  %v5068_v18 = vld [vmem:[#allocation5 + $0x948] ss:$28 sps:$4 sm:$0xff]  }
 0x14d   :  { %4553 = vmatpush3.bf16.msra.mxu1 %v5037_v52  ;;  %v5565_v52 = vmov 0.0  }
 0x14e   :  { %2497 = vmatpush1.bf16.msra.mxu0 %v4921_v20  ;;  %4554 = vmatprep.subr.bf16.mxu1 %v5038_v55  ;;  %v4994_v20 = vld [vmem:[#allocation5 + $0x48] ss:$28 sps:$4 sm:$0xff]   ;;  %v5029_v55 = vld [vmem:[#allocation5 + $0x1d0] ss:$28 sps:$4 sm:$0xff]  }
 0x14f   :  { %2498 = vmatprep.subr.bf16.mxu0 %v4929_v21  ;;  %v5001_v21 = vld [vmem:[#allocation5 + $0x84] ss:$28 sps:$4 sm:$0xff]  }
 0x151   :  { %4555 = vmatpush3.bf16.msra.mxu1 %v5042_v56  ;;  %v5036_v56 = vld [vmem:[#allocation5 + $0x20c] ss:$28 sps:$4 sm:$0xff]  }
 0x152   :  { %2499 = vmatpush1.bf16.msra.mxu0 %v4927_v24  ;;  %4556 = vmatprep.subr.bf16.mxu1 %v5043_v60  ;;  %v4999_v24 = vld [vmem:[#allocation5 + $0x80] ss:$28 sps:$4 sm:$0xff]  }
 0x153   :  { %2500 = vmatprep.subr.bf16.mxu0 %v4935_v25  ;;  %v5006_v25 = vld [vmem:[#allocation5 + $0xbc] ss:$28 sps:$4 sm:$0xff]  }
 0x154   :  { %v5113_v60 = vld [vmem:[#allocation8 + $0x14] ss:$8 sps:$4 sm:$0xff]  }
 0x155   :  { %4557 = vmatpush3.bf16.msra.mxu1 %v5047_v61  ;;  %v5041_v61 = vld [vmem:[#allocation5 + $0x244] ss:$28 sps:$4 sm:$0xff]  }
 0x156   :  { %2501 = vmatpush1.bf16.msra.mxu0 %v4933_v28  ;;  %4558 = vmatprep.subr.bf16.mxu1 %v5048_v1  ;;  %v5004_v28 = vld [vmem:[#allocation5 + $0xb8] ss:$28 sps:$4 sm:$0xff]   ;;  %v5119_v1 = vld [vmem:[#allocation8 + $0x24] ss:$8 sps:$4 sm:$0xff]  }
 0x157   :  { %2502 = vmatprep.subr.bf16.mxu0 %v4941_v29  ;;  %v5011_v29 = vld [vmem:[#allocation5 + $0xf4] ss:$28 sps:$4 sm:$0xff]  }
 0x159   :  { %4559 = vmatpush3.bf16.msra.mxu1 %v5052_v2  ;;  %v5046_v2 = vld [vmem:[#allocation5 + $0x27c] ss:$28 sps:$4 sm:$0xff]  }
 0x15a   :  { %2503 = vmatpush1.bf16.msra.mxu0 %v4939_v33  ;;  %4560 = vmatprep.subr.bf16.mxu1 %v5053_v5  ;;  %v5016_v33 = vld [vmem:[#allocation5 + $0x12c] ss:$28 sps:$4 sm:$0xff]   ;;  %v5125_v5 = vld [vmem:[#allocation8 + $0x34] ss:$8 sps:$4 sm:$0xff]  }
 0x15b   :  { %2504 = vmatprep.subr.bf16.mxu0 %v4947_v34  ;;  %v5088_v34 = vld [vmem:[#allocation5 + $0xa28] ss:$28 sps:$4 sm:$0xff]  }
 0x15d   :  { %4561 = vmatpush3.bf16.msra.mxu1 %v5057_v6  ;;  %v5051_v6 = vld [vmem:[#allocation5 + $0x2b4] ss:$28 sps:$4 sm:$0xff]  }
 0x15e   :  { %2505 = vmatpush1.bf16.msra.mxu0 %v4945_v37  ;;  %4568 = vmatprep.subr.bf16.mxu1 %v5058_v9  ;;  %v5093_v37 = vld [vmem:[#allocation5 + $0xa60] ss:$28 sps:$4 sm:$0xff]   ;;  %v5056_v9 = vld [vmem:[#allocation5 + $0x2ec] ss:$28 sps:$4 sm:$0xff]  }
 0x15f   :  { %2506 = vmatprep.subr.bf16.mxu0 %v4953_v39  ;;  %v5097_v39 = vld [vmem:[#allocation5 + $0x8a0] ss:$28 sps:$4 sm:$0xff]  }
 0x160   :  { %2891 = vmatmul.mubr.bf16.vlgmr.msra.gmra.mrb[16].mxu1 %v5707_v40 }
 0x161   :  { %4569 = vmatpush3.bf16.msra.mxu1 %v5062_v10  ;;  %2930 = vmatprep.mubr.bf16.mxu1 %v5709_v43  ;;  %v5054_v10 = vld [vmem:[#allocation5 + $0x2e8] ss:$28 sps:$4 sm:$0xff]  }
 0x162   :  { %2507 = vmatpush1.bf16.msra.mxu0 %v4951_v42  ;;  %4570 = vmatprep.subr.bf16.mxu1 %v5063_v13  ;;  %v5733_v42 = vpop.f32.mrb[0].mxu1  ;;  %v5061_v13 = vld [vmem:[#allocation5 + $0x324] ss:$28 sps:$4 sm:$0xff]  }
 0x163   :  { %2508 = vmatprep.subr.bf16.mxu0 %v4959_v45  ;;  %v5735_v45 = vpop.f32.mrb[1].mxu1 }
 0x165   :  { %4571 = vmatpush3.bf16.msra.mxu1 %v5067_v14  ;;  %v5135_v14 = vld [vmem:[#allocation8 + $0x50] ss:$8 sps:$4 sm:$0xff]  }
 0x166   :  { %2509 = vmatpush1.bf16.msra.mxu0 %v4957_v47  ;;  %4572 = vmatprep.subr.bf16.mxu1 %v5068_v18  ;;  %v2487_v47 = vpop.f32.mrb[2].mxu1  ;;  %v5066_v18 = vld [vmem:[#allocation5 + $0x35c] ss:$28 sps:$4 sm:$0xff]  }
 0x167   :  { %2510 = vmatprep.subr.bf16.mxu0 %v4962_v48  ;;  %v5101_v48 = vld [vmem:[#allocation5 + $0xa98] ss:$28 sps:$4 sm:$0xff]   ;;  %v2488_v50 = vpop.f32.mrb[3].mxu1 }
 0x168   :  { %v5185_v47 = vld [vmem:[#allocation8 + $0xd4] ss:$8 sps:$4 sm:$0xff]   ;;  %v5183_v50 = vld [vmem:[#allocation8 + $0xd0] ss:$8 sps:$4 sm:$0xff]  }
 0x169   :  { %4573 = vmatpush3.bf16.msra.mxu1 %v5072_v19  ;;  %v5141_v19 = vld [vmem:[#allocation8 + $0x60] ss:$8 sps:$4 sm:$0xff]  }
 0x16a   :  { %2511 = vmatpush1.bf16.msra.mxu0 %v4960_v53  ;;  %4574 = vmatprep.subr.bf16.mxu1 %v5073_v22  ;;  %v5107_v53 = vld [vmem:[#allocation8 + $0x4] ss:$8 sps:$4 sm:$0xff]   ;;  %v5071_v22 = vld [vmem:[#allocation5 + $0x394] ss:$28 sps:$4 sm:$0xff]  }
 0x16b   :  { %2512 = vmatprep.subr.bf16.mxu0 %v4965_v54  ;;  %v5031_v54 = vld [vmem:[#allocation5 + $0x1d4] ss:$28 sps:$4 sm:$0xff]  }
 0x16d   :  { %4575 = vmatpush3.bf16.msra.mxu1 %v5077_v23  ;;  %v5147_v23 = vld [vmem:[#allocation8 + $0x70] ss:$8 sps:$4 sm:$0xff]  }
 0x16e   :  { %2513 = vmatpush1.bf16.msra.mxu0 %v4963_v58  ;;  %4576 = vmatprep.subr.bf16.mxu1 %v5078_v26  ;;  %v5034_v58 = vld [vmem:[#allocation5 + $0x208] ss:$28 sps:$4 sm:$0xff]  }
 0x16f   :  { %2514 = vmatprep.subr.bf16.mxu0 %v4971_v59  ;;  %v5105_v59 = vld [vmem:[#allocation8] ss:$8 sps:$4 sm:$0xff]  }
 0x170   :  { %v5076_v26 = vld [vmem:[#allocation5 + $0x3cc] ss:$28 sps:$4 sm:$0xff]  }
 0x171   :  { %4577 = vmatpush3.bf16.msra.mxu1 %v5082_v27  ;;  %v5153_v27 = vld [vmem:[#allocation8 + $0x80] ss:$8 sps:$4 sm:$0xff]  }
 0x172   :  { %2515 = vmatpush1.bf16.msra.mxu0 %v4969_v62  ;;  %4578 = vmatprep.subr.bf16.mxu1 %v5083_v31  ;;  %v5039_v62 = vld [vmem:[#allocation5 + $0x240] ss:$28 sps:$4 sm:$0xff]  }
 0x173   :  { %2516 = vmatprep.subr.bf16.mxu0 %v4977_v63  ;;  %v5111_v63 = vld [vmem:[#allocation8 + $0x10] ss:$8 sps:$4 sm:$0xff]   ;;  %v5081_v31 = vld [vmem:[#allocation5 + $0x404] ss:$28 sps:$4 sm:$0xff]  }
 0x175   :  { %4579 = vmatpush3.bf16.msra.mxu1 %v5087_v32  ;;  %v5159_v32 = vld [vmem:[#allocation8 + $0x90] ss:$8 sps:$4 sm:$0xff]  }
 0x176   :  { %2517 = vmatpush1.bf16.msra.mxu0 %v4975_v3  ;;  %4580 = vmatprep.subr.bf16.mxu1 %v5088_v34  ;;  %v5044_v3 = vld [vmem:[#allocation5 + $0x278] ss:$28 sps:$4 sm:$0xff]  }
 0x177   :  { %2518 = vmatprep.subr.bf16.mxu0 %v4981_v4  ;;  %v5117_v4 = vld [vmem:[#allocation8 + $0x20] ss:$8 sps:$4 sm:$0xff]   ;;  %v5086_v34 = vld [vmem:[#allocation5 + $0x43c] ss:$28 sps:$4 sm:$0xff]  }
 0x179   :  { %4581 = vmatpush3.bf16.msra.mxu1 %v5092_v35  ;;  %v5084_v35 = vld [vmem:[#allocation5 + $0x438] ss:$28 sps:$4 sm:$0xff]  }
 0x17a   :  { %2519 = vmatpush1.bf16.msra.mxu0 %v4979_v7  ;;  %4582 = vmatprep.subr.bf16.mxu1 %v5093_v37  ;;  %v5049_v7 = vld [vmem:[#allocation5 + $0x2b0] ss:$28 sps:$4 sm:$0xff]  }
 0x17b   :  { %2520 = vmatprep.subr.bf16.mxu0 %v4986_v8  ;;  %v5123_v8 = vld [vmem:[#allocation8 + $0x30] ss:$8 sps:$4 sm:$0xff]  }
 0x17c   :  { %v5091_v37 = vld [vmem:[#allocation5 + $0x474] ss:$28 sps:$4 sm:$0xff]  }
 0x17d   :  { %4583 = vmatpush3.bf16.msra.mxu1 %v5097_v39  ;;  %v5179_v39 = vld [vmem:[#allocation8 + $0xc4] ss:$8 sps:$4 sm:$0xff]  }
 0x17e   :  { %2521 = vmatpush1.bf16.msra.mxu0 %v4984_v11  ;;  %4614 = vmatprep.subr.bf16.mxu1 %v5565_v52  ;;  %v5129_v11 = vld [vmem:[#allocation8 + $0x40] ss:$8 sps:$4 sm:$0xff]  }
 0x17f   :  { %2654 = vmatprep.subr.bf16.mxu0 %v4991_v12  ;;  %v5137_v12 = vld [vmem:[#allocation8 + $0x54] ss:$8 sps:$4 sm:$0xff]  }
 0x180   :  { %2931 = vmatmul.mubr.bf16.vlgmr.msra.gmra.mrb[20].mxu1 %v5715_v51 }
 0x181   :  { %2523 = vmatmul.mubr.bf16.vlgmr.msra.gmra.mrb[4].mxu0 %v5703_v57  ;;  %4615 = vmatpush3.bf16.msra.mxu1 %v5101_v48  ;;  %v5100_v48 = vld [vmem:[#allocation5 + $0x4e4] ss:$28 sps:$4 sm:$0xff]  }
 0x182   :  { %2655 = vmatpush1.bf16.msra.mxu0 %v4989_v16  ;;  %2686 = vmatprep.mubr.bf16.mxu0 %v5693_v15  ;;  %v5009_v15 = vld [vmem:[#allocation5 + $0xf0] ss:$28 sps:$4 sm:$0xff]   ;;  %v5059_v16 = vld [vmem:[#allocation5 + $0x320] ss:$28 sps:$4 sm:$0xff]  }
 0x183   :  { %2656 = vmatprep.subr.bf16.mxu0 %v4996_v17  ;;  %4616 = vmatprep.mubr.msk.bf16.mxu1 %vm5566_vm1, %v5565_v52  ;;  %v5143_v17 = vld [vmem:[#allocation8 + $0x64] ss:$8 sps:$4 sm:$0xff]   ;;  %v5098_v52 = vld [vmem:[#allocation5 + $0x4e0] ss:$28 sps:$4 sm:$0xff]  }
 0x184   :  { %3676 = vmatprep.subr.bf16.mxu1 %v5107_v53  ;;  %v5191_v53 = vld [vmem:[#allocation8 + $0xe4] ss:$8 sps:$4 sm:$0xff]  }
 0x186   :  { %2657 = vmatpush1.bf16.msra.mxu0 %v4994_v20  ;;  %v5064_v20 = vld [vmem:[#allocation5 + $0x358] ss:$28 sps:$4 sm:$0xff]  }
 0x187   :  { %2658 = vmatprep.subr.bf16.mxu0 %v5001_v21  ;;  %v5149_v21 = vld [vmem:[#allocation8 + $0x74] ss:$8 sps:$4 sm:$0xff]  }
 0x188   :  { %4617 = vmatmul.mubr.msk.bf16.vlgmr.msra.gmra.mrb[24].mxu1 %vm2322_vm0, %v5696_v30  ;;  %v5131_v30 = vld [vmem:[#allocation8 + $0x44] ss:$8 sps:$4 sm:$0xff]  }
 0x189   :  { %3677 = vmatpush1.bf16.msra.mxu1 %v5105_v59  ;;  %v5110_v59 = vld [vmem:[#allocation5 + $0x554] ss:$28 sps:$4 sm:$0xff]  }
 0x18a   :  { %2659 = vmatpush1.bf16.msra.mxu0 %v4999_v24  ;;  %3678 = vmatprep.subr.bf16.mxu1 %v5113_v60  ;;  %v5069_v24 = vld [vmem:[#allocation5 + $0x390] ss:$28 sps:$4 sm:$0xff]  }
 0x18b   :  { %2660 = vmatprep.subr.bf16.mxu0 %v5006_v25  ;;  %v5155_v25 = vld [vmem:[#allocation8 + $0x84] ss:$8 sps:$4 sm:$0xff]   ;;  %v5195_v60 = vld [vmem:[#allocation8 + $0xf0] ss:$8 sps:$4 sm:$0xff]  }
 0x18d   :  { %3679 = vmatpush1.bf16.msra.mxu1 %v5111_v63  ;;  %v5116_v63 = vld [vmem:[#allocation5 + $0x58c] ss:$28 sps:$4 sm:$0xff]  }
 0x18e   :  { %2661 = vmatpush1.bf16.msra.mxu0 %v5004_v28  ;;  %3680 = vmatprep.subr.bf16.mxu1 %v5119_v1  ;;  %v5074_v28 = vld [vmem:[#allocation5 + $0x3c8] ss:$28 sps:$4 sm:$0xff]  }
 0x18f   :  { %2662 = vmatprep.subr.bf16.mxu0 %v5011_v29  ;;  %v5161_v29 = vld [vmem:[#allocation8 + $0x94] ss:$8 sps:$4 sm:$0xff]   ;;  %v5114_v1 = vld [vmem:[#allocation5 + $0x588] ss:$28 sps:$4 sm:$0xff]  }
 0x191   :  { %3681 = vmatpush1.bf16.msra.mxu1 %v5117_v4  ;;  %v5128_v4 = vld [vmem:[#allocation5 + $0x5fc] ss:$28 sps:$4 sm:$0xff]  }
 0x192   :  { %2663 = vmatpush1.bf16.msra.mxu0 %v5009_v15  ;;  %3682 = vmatprep.subr.bf16.mxu1 %v5125_v5  ;;  %v5079_v15 = vld [vmem:[#allocation5 + $0x400] ss:$28 sps:$4 sm:$0xff]   ;;  %v5126_v5 = vld [vmem:[#allocation5 + $0x5f8] ss:$28 sps:$4 sm:$0xff]  }
 0x193   :  { %2664 = vmatprep.subr.bf16.mxu0 %v5016_v33  ;;  %v5167_v33 = vld [vmem:[#allocation8 + $0xa4] ss:$8 sps:$4 sm:$0xff]  }
 0x195   :  { %3683 = vmatpush1.bf16.msra.mxu1 %v5123_v8  ;;  %v5140_v8 = vld [vmem:[#allocation5 + $0x66c] ss:$28 sps:$4 sm:$0xff]  }
 0x196   :  { %2665 = vmatpush1.bf16.msra.mxu0 %v5014_v36  ;;  %3684 = vmatprep.subr.bf16.mxu1 %v5131_v30  ;;  %v5173_v36 = vld [vmem:[#allocation8 + $0xb4] ss:$8 sps:$4 sm:$0xff]   ;;  %v5138_v30 = vld [vmem:[#allocation5 + $0x668] ss:$28 sps:$4 sm:$0xff]  }
 0x197   :  { %2666 = vmatprep.subr.bf16.mxu0 %v5021_v38  ;;  %v5171_v38 = vld [vmem:[#allocation8 + $0xb0] ss:$8 sps:$4 sm:$0xff]  }
 0x199   :  { %3685 = vmatpush1.bf16.msra.mxu1 %v5129_v11  ;;  %v5152_v11 = vld [vmem:[#allocation5 + $0x6dc] ss:$28 sps:$4 sm:$0xff]  }
 0x19a   :  { %2667 = vmatpush1.bf16.msra.mxu0 %v5019_v41  ;;  %3686 = vmatprep.subr.bf16.mxu1 %v5137_v12  ;;  %v5096_v41 = vld [vmem:[#allocation5 + $0x4ac] ss:$28 sps:$4 sm:$0xff]   ;;  %v5150_v12 = vld [vmem:[#allocation5 + $0x6d8] ss:$28 sps:$4 sm:$0xff]  }
 0x19b   :  { %2668 = vmatprep.subr.bf16.mxu0 %v5026_v44  ;;  %v5177_v44 = vld [vmem:[#allocation8 + $0xc0] ss:$8 sps:$4 sm:$0xff]  }
 0x19d   :  { %3687 = vmatpush1.bf16.msra.mxu1 %v5135_v14  ;;  %v5156_v14 = vld [vmem:[#allocation5 + $0x710] ss:$28 sps:$4 sm:$0xff]  }
 0x19e   :  { %2669 = vmatpush1.bf16.msra.mxu0 %v5024_v46  ;;  %3688 = vmatprep.subr.bf16.mxu1 %v5143_v17  ;;  %v5094_v46 = vld [vmem:[#allocation5 + $0x4a8] ss:$28 sps:$4 sm:$0xff]  }
 0x19f   :  { %2670 = vmatprep.subr.bf16.mxu0 %v5031_v54  ;;  %v5104_v54 = vld [vmem:[#allocation5 + $0x51c] ss:$28 sps:$4 sm:$0xff]   ;;  %v5162_v17 = vld [vmem:[#allocation5 + $0x748] ss:$28 sps:$4 sm:$0xff]  }
 0x1a1   :  { %3689 = vmatpush1.bf16.msra.mxu1 %v5141_v19  ;;  %v523_v19 = vlaneseq }
 0x1a2   :  { %2671 = vmatpush1.bf16.msra.mxu0 %v5029_v55  ;;  %3690 = vmatprep.subr.bf16.mxu1 %v5149_v21  ;;  %v5189_v55 = vld [vmem:[#allocation8 + $0xe0] ss:$8 sps:$4 sm:$0xff]   ;;  %v5176_v21 = vld [vmem:[#allocation5 + $0x7bc] ss:$28 sps:$4 sm:$0xff]  }
 0x1a3   :  { %2672 = vmatprep.subr.bf16.mxu0 %v5036_v56  ;;  %v5102_v56 = vld [vmem:[#allocation5 + $0x518] ss:$28 sps:$4 sm:$0xff]  }
 0x1a5   :  { %3691 = vmatpush1.bf16.msra.mxu1 %v5147_v23 }
 0x1a6   :  { %2673 = vmatpush1.bf16.msra.mxu0 %v5034_v58  ;;  %3692 = vmatprep.subr.bf16.mxu1 %v5155_v25  ;;  %v5197_v58 = vld [vmem:[#allocation8 + $0xf4] ss:$8 sps:$4 sm:$0xff]  }
 0x1a7   :  { %2674 = vmatprep.subr.bf16.mxu0 %v5041_v61  ;;  %v5108_v61 = vld [vmem:[#allocation5 + $0x550] ss:$28 sps:$4 sm:$0xff]  }
 0x1a9   :  { %3693 = vmatpush1.bf16.msra.mxu1 %v5153_v27  ;;  %v5182_v27 = vld [vmem:[#allocation5 + $0x7f4] ss:$28 sps:$4 sm:$0xff]  }
 0x1aa   :  { %2675 = vmatpush1.bf16.msra.mxu0 %v5039_v62  ;;  %3694 = vmatprep.subr.bf16.mxu1 %v5161_v29  ;;  %v5203_v62 = vld [vmem:[#allocation8 + $0x104] ss:$8 sps:$4 sm:$0xff]   ;;  %v5751_v29 = vld [vmem:[#allocation7] sm:$0xff] }
 0x1ab   :  { %2676 = vmatprep.subr.bf16.mxu0 %v5046_v2  ;;  %v5122_v2 = vld [vmem:[#allocation5 + $0x5c4] ss:$28 sps:$4 sm:$0xff]  }
 0x1ad   :  { %3695 = vmatpush1.bf16.msra.mxu1 %v5159_v32  ;;  %v5188_v32 = vld [vmem:[#allocation5 + $0x82c] ss:$28 sps:$4 sm:$0xff]  }
 0x1ae   :  { %2677 = vmatpush1.bf16.msra.mxu0 %v5044_v3  ;;  %3696 = vmatprep.subr.bf16.mxu1 %v5167_v33  ;;  %v5120_v3 = vld [vmem:[#allocation5 + $0x5c0] ss:$28 sps:$4 sm:$0xff]  }
 0x1af   :  { %2678 = vmatprep.subr.bf16.mxu0 %v5051_v6  ;;  %v5134_v6 = vld [vmem:[#allocation5 + $0x634] ss:$28 sps:$4 sm:$0xff]  }
 0x1b2   :  { %2679 = vmatpush1.bf16.msra.mxu0 %v5049_v7  ;;  %v5132_v7 = vld [vmem:[#allocation5 + $0x630] ss:$28 sps:$4 sm:$0xff]  }
 0x1b3   :  { %2680 = vmatprep.subr.bf16.mxu0 %v5056_v9  ;;  %v5146_v9 = vld [vmem:[#allocation5 + $0x6a4] ss:$28 sps:$4 sm:$0xff]  }
 0x1b6   :  { %2681 = vmatpush1.bf16.msra.mxu0 %v5054_v10  ;;  %v5144_v10 = vld [vmem:[#allocation5 + $0x6a0] ss:$28 sps:$4 sm:$0xff]  }
 0x1b7   :  { %2682 = vmatprep.subr.bf16.mxu0 %v5061_v13  ;;  %v5158_v13 = vld [vmem:[#allocation5 + $0x714] ss:$28 sps:$4 sm:$0xff]  }
 0x1ba   :  { %2683 = vmatpush1.bf16.msra.mxu0 %v5059_v16  ;;  %v5164_v16 = vld [vmem:[#allocation5 + $0x74c] ss:$28 sps:$4 sm:$0xff]  }
 0x1bb   :  { %2684 = vmatprep.subr.bf16.mxu0 %v5066_v18  ;;  %v5170_v18 = vld [vmem:[#allocation5 + $0x784] ss:$28 sps:$4 sm:$0xff]  }
 0x1be   :  { %2685 = vmatpush1.bf16.msra.mxu0 %v5064_v20  ;;  %v5168_v20 = vld [vmem:[#allocation5 + $0x780] ss:$28 sps:$4 sm:$0xff]  }
 0x1bf   :  { %2695 = vmatprep.subr.bf16.mxu0 %v5071_v22 }
 0x1c1   :  { %2687 = vmatmul.mubr.bf16.vlgmr.msra.gmra.mrb[8].mxu0 %v5703_v57  ;;  %v5165_v57 = vld [vmem:[#allocation8 + $0xa0] ss:$8 sps:$4 sm:$0xff]  }
 0x1c2   :  { %2696 = vmatpush1.bf16.msra.mxu0 %v5069_v24  ;;  %2727 = vmatprep.mubr.bf16.mxu0 %v5700_v49  ;;  %v5089_v49 = vld [vmem:[#allocation5 + $0x470] ss:$28 sps:$4 sm:$0xff]   ;;  %v5748_v24 = vshrl.u32 %v523_v19, 7 }
 0x1c3   :  { %2697 = vmatprep.subr.bf16.mxu0 %v5076_v26  ;;  %3697 = vmatpush1.bf16.msra.mxu1 %v5165_v57  ;;  %v5239_v19 = vld [vmem:[#allocation8 + $0x164] ss:$8 sps:$4 sm:$0xff]  }
 0x1c4   :  { %3698 = vmatprep.subr.bf16.mxu1 %v5173_v36  ;;  %v5186_v36 = vld [vmem:[#allocation5 + $0x828] ss:$28 sps:$4 sm:$0xff]  }
 0x1c6   :  { %2698 = vmatpush1.bf16.msra.mxu0 %v5074_v28  ;;  %v5180_v28 = vld [vmem:[#allocation5 + $0x7f0] ss:$28 sps:$4 sm:$0xff]  }
 0x1c7   :  { %2699 = vmatprep.subr.bf16.mxu0 %v5081_v31  ;;  %3699 = vmatpush1.bf16.msra.mxu1 %v5171_v38  ;;  %v529_v31 = vsub.s32 1, %v5748_v24  ;;  %v5194_v38 = vld [vmem:[#allocation5 + $0x864] ss:$28 sps:$4 sm:$0xff]  }
 0x1c8   :  { %3700 = vmatprep.subr.bf16.mxu1 %v5179_v39 }
 0x1ca   :  { %2700 = vmatpush1.bf16.msra.mxu0 %v5079_v15 }
 0x1cb   :  { %2701 = vmatprep.subr.bf16.mxu0 %v5086_v34  ;;  %3701 = vmatpush1.bf16.msra.mxu1 %v5177_v44 }
 0x1cc   :  { %3702 = vmatprep.subr.bf16.mxu1 %v5185_v47  ;;  %v5192_v47 = vld [vmem:[#allocation5 + $0x860] ss:$28 sps:$4 sm:$0xff]  }
 0x1ce   :  { %2702 = vmatpush1.bf16.msra.mxu0 %v5084_v35  ;;  %v530_v35 = vrot.slane %v5751_v29, %v529_v31 }
 0x1cf   :  { %2703 = vmatprep.subr.bf16.mxu0 %v5091_v37  ;;  %3703 = vmatpush1.bf16.msra.mxu1 %v5183_v50 }
 0x1d0   :  { %3704 = vmatprep.subr.bf16.mxu1 %v5191_v53 }
 0x1d2   :  { %2704 = vmatpush1.bf16.msra.mxu0 %v5089_v49 }
 0x1d3   :  { %2705 = vmatprep.subr.bf16.mxu0 %v5096_v41  ;;  %3705 = vmatpush1.bf16.msra.mxu1 %v5189_v55 }
 0x1d4   :  { %3706 = vmatprep.subr.bf16.mxu1 %v5197_v58  ;;  %v5206_v58 = vld [vmem:[#allocation5 + $0x8d4] ss:$28 sps:$4 sm:$0xff]  }
 0x1d6   :  { %2706 = vmatpush1.bf16.msra.mxu0 %v5094_v46 }
 0x1d7   :  { %2707 = vmatprep.subr.bf16.mxu0 %v5100_v48  ;;  %3707 = vmatpush1.bf16.msra.mxu1 %v5195_v60  ;;  %v5201_v60 = vld [vmem:[#allocation8 + $0x100] ss:$8 sps:$4 sm:$0xff]  }
 0x1d8   :  { %3717 = vmatprep.subr.bf16.mxu1 %v5203_v62  ;;  %v5209_v62 = vld [vmem:[#allocation8 + $0x114] ss:$8 sps:$4 sm:$0xff]  }
 0x1da   :  { %2708 = vmatpush1.bf16.msra.mxu0 %v5098_v52  ;;  %v5200_v52 = vld [vmem:[#allocation5 + $0x89c] ss:$28 sps:$4 sm:$0xff]  }
 0x1db   :  { %2709 = vmatprep.subr.bf16.mxu0 %v5104_v54 }
 0x1de   :  { %2710 = vmatpush1.bf16.msra.mxu0 %v5102_v56  ;;  %v5198_v56 = vld [vmem:[#allocation5 + $0x898] ss:$28 sps:$4 sm:$0xff]  }
 0x1df   :  { %2711 = vmatprep.subr.bf16.mxu0 %v5110_v59 }
 0x1e2   :  { %2712 = vmatpush1.bf16.msra.mxu0 %v5108_v61 }
 0x1e3   :  { %2713 = vmatprep.subr.bf16.mxu0 %v5116_v63  ;;  %v5204_v63 = vld [vmem:[#allocation5 + $0x8d0] ss:$28 sps:$4 sm:$0xff]  }
 0x1e6   :  { %2714 = vmatpush1.bf16.msra.mxu0 %v5114_v1  ;;  %v5207_v1 = vld [vmem:[#allocation8 + $0x110] ss:$8 sps:$4 sm:$0xff]  }
 0x1e7   :  { %2715 = vmatprep.subr.bf16.mxu0 %v5122_v2  ;;  %v5210_v2 = vld [vmem:[#allocation5 + $0x908] ss:$28 sps:$4 sm:$0xff]  }
 0x1ea   :  { %2716 = vmatpush1.bf16.msra.mxu0 %v5120_v3  ;;  %v5218_v3 = vld [vmem:[#allocation5 + $0x944] ss:$28 sps:$4 sm:$0xff]  }
 0x1eb   :  { %2717 = vmatprep.subr.bf16.mxu0 %v5128_v4  ;;  %v5744_v22 = vpop.f32.mrb[4].mxu1  ;;  %v5213_v4 = vld [vmem:[#allocation8 + $0x120] ss:$8 sps:$4 sm:$0xff]  }
 0x1ec   :  { %v5746_v23 = vpop.f32.mrb[5].mxu1 }
 0x1ed   :  { %v2651_v25 = vpop.f32.mrb[6].mxu1 }
 0x1ee   :  { %2718 = vmatpush1.bf16.msra.mxu0 %v5126_v5  ;;  %v2652_v26 = vpop.f32.mrb[7].mxu1  ;;  %v5221_v5 = vld [vmem:[#allocation8 + $0x134] ss:$8 sps:$4 sm:$0xff]   ;;  %v5234_v25 = vld [vmem:[#allocation5 + $0x9e8] ss:$28 sps:$4 sm:$0xff]  }
 0x1ef   :  { %2719 = vmatprep.subr.bf16.mxu0 %v5134_v6  ;;  %v5216_v6 = vld [vmem:[#allocation5 + $0x940] ss:$28 sps:$4 sm:$0xff]  }
 0x1f0   :  { %v5242_v26 = vld [vmem:[#allocation5 + $0xa24] ss:$28 sps:$4 sm:$0xff]  }
 0x1f2   :  { %2720 = vmatpush1.bf16.msra.mxu0 %v5132_v7  ;;  %v5224_v7 = vld [vmem:[#allocation5 + $0x97c] ss:$28 sps:$4 sm:$0xff]  }
 0x1f3   :  { %2721 = vmatprep.subr.bf16.mxu0 %v5140_v8  ;;  %v5754_v15 = vpop.f32.mrb[8].mxu1  ;;  %v5219_v8 = vld [vmem:[#allocation8 + $0x130] ss:$8 sps:$4 sm:$0xff]  }
 0x1f4   :  { %v5756_v33 = vpop.f32.mrb[9].mxu1 }
 0x1f5   :  { %v2815_v57 = vpop.f32.mrb[10].mxu1 }
 0x1f6   :  { %2722 = vmatpush1.bf16.msra.mxu0 %v5138_v30  ;;  %v2816_v37 = vpop.f32.mrb[11].mxu1  ;;  %v5227_v30 = vld [vmem:[#allocation8 + $0x144] ss:$8 sps:$4 sm:$0xff]   ;;  %v5243_v57 = vld [vmem:[#allocation8 + $0x170] ss:$8 sps:$4 sm:$0xff]  }
 0x1f7   :  { %2723 = vmatprep.subr.bf16.mxu0 %v5146_v9  ;;  %v5222_v9 = vld [vmem:[#allocation5 + $0x978] ss:$28 sps:$4 sm:$0xff]   ;;  %v5249_v37 = vld [vmem:[#allocation8 + $0x180] ss:$8 sps:$4 sm:$0xff]  }
 0x1fa   :  { %2724 = vmatpush1.bf16.msra.mxu0 %v5144_v10  ;;  %v5230_v10 = vld [vmem:[#allocation5 + $0x9b4] ss:$28 sps:$4 sm:$0xff]  }
 0x1fb   :  { %2725 = vmatprep.subr.bf16.mxu0 %v5152_v11  ;;  %v5225_v11 = vld [vmem:[#allocation8 + $0x140] ss:$8 sps:$4 sm:$0xff]  }
 0x1fe   :  { %2726 = vmatpush1.bf16.msra.mxu0 %v5150_v12  ;;  %v5233_v12 = vld [vmem:[#allocation8 + $0x154] ss:$8 sps:$4 sm:$0xff]  }
 0x1ff   :  { %2736 = vmatprep.subr.bf16.mxu0 %v5158_v13  ;;  %v5228_v13 = vld [vmem:[#allocation5 + $0x9b0] ss:$28 sps:$4 sm:$0xff]  }
 0x201   :  { %2728 = vmatmul.mubr.bf16.vlgmr.msra.gmra.mrb[8].mxu0 %v5707_v40  ;;  %v5174_v40 = vld [vmem:[#allocation5 + $0x7b8] ss:$28 sps:$4 sm:$0xff]  }
 0x202   :  { %2737 = vmatpush1.bf16.msra.mxu0 %v5156_v14  ;;  %2768 = vmatprep.mubr.bf16.mxu0 %v5709_v43  ;;  %v525_v43 = vsub.s32 0, %v5748_v24  ;;  %v5236_v14 = vld [vmem:[#allocation5 + $0x9ec] ss:$28 sps:$4 sm:$0xff]  }
 0x203   :  { %2738 = vmatprep.subr.bf16.mxu0 %v5164_v16 }
 0x204   :  { %v526_v34 = vrot.slane %v5751_v29, %v525_v43 }
 0x206   :  { %2739 = vmatpush1.bf16.msra.mxu0 %v5162_v17  ;;  %v5231_v17 = vld [vmem:[#allocation8 + $0x150] ss:$8 sps:$4 sm:$0xff]  }
 0x207   :  { %2740 = vmatprep.subr.bf16.mxu0 %v5170_v18 }
 0x20a   :  { %2741 = vmatpush1.bf16.msra.mxu0 %v5168_v20 }
 0x20b   :  { %2742 = vmatprep.subr.bf16.mxu0 %v5176_v21 }
 0x20e   :  { %2743 = vmatpush1.bf16.msra.mxu0 %v5174_v40 }
 0x20f   :  { %2744 = vmatprep.subr.bf16.mxu0 %v5182_v27  ;;  %v5237_v27 = vld [vmem:[#allocation8 + $0x160] ss:$8 sps:$4 sm:$0xff]  }
 0x212   :  { %2745 = vmatpush1.bf16.msra.mxu0 %v5180_v28  ;;  %v5245_v28 = vld [vmem:[#allocation8 + $0x174] ss:$8 sps:$4 sm:$0xff]  }
 0x213   :  { %2746 = vmatprep.subr.bf16.mxu0 %v5188_v32  ;;  %v4540_v16 = vpop.f32.mrb[12].mxu1  ;;  %v5240_v32 = vld [vmem:[#allocation5 + $0xa20] ss:$28 sps:$4 sm:$0xff]  }
 0x214   :  { %v2442_v49 = vpop.f32.mrb[0].mxu0  ;;  %v4541_v18 = vpop.f32.mrb[13].mxu1 }
 0x215   :  { %v4620_v39 = vadd.f32 %v2442_v49, %v526_v34  ;;  %v2444_v41 = vpop.f32.mrb[1].mxu0  ;;  %v4542_v20 = vadd.f32 %v4541_v18, %v4540_v16  ;;  %v4543_v21 = vpop.f32.mrb[14].mxu1  ;;  %v5248_v34 = vld [vmem:[#allocation5 + $0xa5c] ss:$28 sps:$4 sm:$0xff]   ;;  %v5273_v18 = vld [vmem:[#allocation8 + $0x200] ss:$8 sps:$4 sm:$0xff]  }
 0x216   :  { %v4622_v44 = vadd.f32 %v2444_v41, %v530_v35  ;;  %v2446_v46 = vpop.f32.mrb[2].mxu0  ;;  %2747 = vmatpush1.bf16.msra.mxu0 %v5186_v36  ;;  %v4544_v40 = vpop.f32.mrb[15].mxu1  ;;  %v5251_v35 = vld [vmem:[#allocation8 + $0x184] ss:$8 sps:$4 sm:$0xff]   ;;  %v5246_v36 = vld [vmem:[#allocation5 + $0xa58] ss:$28 sps:$4 sm:$0xff]  }
 0x217   :  { %v4621_v48 = vadd.f32 %v4620_v39, %v5733_v42  ;;  %v2447_v50 = vpop.f32.mrb[3].mxu0  ;;  %2748 = vmatprep.subr.bf16.mxu0 %v5194_v38  ;;  %v5212_v42 = vld [vmem:[#allocation5 + $0x90c] ss:$28 sps:$4 sm:$0xff]   ;;  %v5254_v38 = vld [vmem:[#allocation8 + $0x194] ss:$8 sps:$4 sm:$0xff]   ;;  %v549_v46 = vsub.s32 6, %v5748_v24 }
 0x218   :  { %v4623_v53 = vadd.f32 %v4622_v44, %v5735_v45  ;;  %v5215_v45 = vld [vmem:[#allocation8 + $0x124] ss:$8 sps:$4 sm:$0xff]   ;;  %v5252_v49 = vld [vmem:[#allocation8 + $0x190] ss:$8 sps:$4 sm:$0xff]   ;;  %v5255_v41 = vld [vmem:[#allocation8 + $0x1a0] ss:$8 sps:$4 sm:$0xff]  }
 0x219   :  { %v2978_v54 = vmax.f32 %v4621_v48, 0.0  ;;  %v5257_v39 = vld [vmem:[#allocation8 + $0x1a4] ss:$8 sps:$4 sm:$0xff]   ;;  %v5260_v44 = vld [vmem:[#allocation8 + $0x1b4] ss:$8 sps:$4 sm:$0xff]   ;;  %v550_v50 = vrot.slane %v5751_v29, %v549_v46 }
 0x21a   :  { %v2979_v55 = vmax.f32 %v4623_v53, 0.0  ;;  %2749 = vmatpush1.bf16.msra.mxu0 %v5192_v47  ;;  %v5258_v47 = vld [vmem:[#allocation8 + $0x1b0] ss:$8 sps:$4 sm:$0xff]   ;;  %v5263_v48 = vld [vmem:[#allocation8 + $0x1c4] ss:$8 sps:$4 sm:$0xff]  }
 0x21b   :  { %2750 = vmatprep.subr.bf16.mxu0 %v5200_v52  ;;  %v2985_v61 = vpack.c.bf16 %v2978_v54, %v2978_v54  ;;  %v5261_v52 = vld [vmem:[#allocation8 + $0x1c0] ss:$8 sps:$4 sm:$0xff]   ;;  %v5266_v53 = vld [vmem:[#allocation8 + $0x1d4] ss:$8 sps:$4 sm:$0xff]   ;;  %v537_v54 = vsub.s32 3, %v5748_v24 }
 0x21c   :  { %v2986_v59 = vpack.c.bf16 %v2979_v55, %v2979_v55  ;;  %v2853_v55 = vadd.f32 %v4542_v20, %v550_v50  ;;  %v5276_v20 = vld [vmem:[#allocation8 + $0x210] ss:$8 sps:$4 sm:$0xff]   ;;  %v5284_v21 = vld [vmem:[#allocation8 + $0x234] ss:$8 sps:$4 sm:$0xff]   ;;  %v5287_v40 = vld [vmem:[#allocation8 + $0x244] ss:$8 sps:$4 sm:$0xff]  }
 0x21d   :  { %v5294_v46 = vld [vmem:[#allocation8 + $0x270] ss:$8 sps:$4 sm:$0xff]  }
 0x21e   :  { %2751 = vmatpush1.bf16.msra.mxu0 %v5198_v56  ;;  %3708 = vmatprep.mubr.bf16.mxu1 %v2986_v59 }
 0x21f   :  { %3709 = vmatmul.mubr.bf16.vlgmr.msra.gmra.mrb[28].mxu1 %v2985_v61  ;;  %2752 = vmatprep.subr.bf16.mxu0 %v5206_v58  ;;  %v5264_v58 = vld [vmem:[#allocation8 + $0x1d0] ss:$8 sps:$4 sm:$0xff]   ;;  %v5269_v61 = vld [vmem:[#allocation8 + $0x1e4] ss:$8 sps:$4 sm:$0xff]  }
 0x220   :  { %3718 = vmatpush1.bf16.msra.mxu1 %v5201_v60 }
 0x221   :  { %3719 = vmatprep.subr.bf16.mxu1 %v5209_v62 }
 0x222   :  { %2753 = vmatpush1.bf16.msra.mxu0 %v5204_v63 }
 0x223   :  { %2754 = vmatprep.subr.bf16.mxu0 %v5212_v42  ;;  %v538_v42 = vrot.slane %v5751_v29, %v537_v54  ;;  %v5300_v54 = vld [vmem:[#allocation8 + $0x290] ss:$8 sps:$4 sm:$0xff]  }
 0x224   :  { %3720 = vmatpush1.bf16.msra.mxu1 %v5207_v1 }
 0x225   :  { %3721 = vmatprep.subr.bf16.mxu1 %v5215_v45 }
 0x226   :  { %2755 = vmatpush1.bf16.msra.mxu0 %v5210_v2 }
 0x227   :  { %2756 = vmatprep.subr.bf16.mxu0 %v5218_v3  ;;  %v5267_v3 = vld [vmem:[#allocation8 + $0x1e0] ss:$8 sps:$4 sm:$0xff]  }
 0x228   :  { %3722 = vmatpush1.bf16.msra.mxu1 %v5213_v4 }
 0x229   :  { %3723 = vmatprep.subr.bf16.mxu1 %v5221_v5 }
 0x22a   :  { %2757 = vmatpush1.bf16.msra.mxu0 %v5216_v6  ;;  %v5272_v6 = vld [vmem:[#allocation8 + $0x1f4] ss:$8 sps:$4 sm:$0xff]  }
 0x22b   :  { %2758 = vmatprep.subr.bf16.mxu0 %v5224_v7 }
 0x22c   :  { %3724 = vmatpush1.bf16.msra.mxu1 %v5219_v8 }
 0x22d   :  { %3725 = vmatprep.subr.bf16.mxu1 %v5227_v30 }
 0x22e   :  { %2759 = vmatpush1.bf16.msra.mxu0 %v5222_v9 }
 0x22f   :  { %2760 = vmatprep.subr.bf16.mxu0 %v5230_v10 }
 0x230   :  { %3726 = vmatpush1.bf16.msra.mxu1 %v5225_v11  ;;  %v5270_v11 = vld [vmem:[#allocation8 + $0x1f0] ss:$8 sps:$4 sm:$0xff]  }
 0x231   :  { %3727 = vmatprep.subr.bf16.mxu1 %v5233_v12 }
 0x232   :  { %2761 = vmatpush1.bf16.msra.mxu0 %v5228_v13  ;;  %v5275_v13 = vld [vmem:[#allocation8 + $0x204] ss:$8 sps:$4 sm:$0xff]  }
 0x233   :  { %2762 = vmatprep.subr.bf16.mxu0 %v5236_v14  ;;  %v4562_v56 = vpop.f32.mrb[16].mxu1 }
 0x234   :  { %3728 = vmatpush1.bf16.msra.mxu1 %v5231_v17  ;;  %v4563_v59 = vpop.f32.mrb[17].mxu1 }
 0x235   :  { %3729 = vmatprep.subr.bf16.mxu1 %v5239_v19  ;;  %v4564_v62 = vadd.f32 %v4563_v59, %v4562_v56  ;;  %v4565_v63 = vpop.f32.mrb[18].mxu1  ;;  %v5278_v19 = vld [vmem:[#allocation8 + $0x214] ss:$8 sps:$4 sm:$0xff]   ;;  %v5303_v56 = vld [vmem:[#allocation8 + $0x2a0] ss:$8 sps:$4 sm:$0xff]  }
 0x236   :  { %2763 = vmatpush1.bf16.msra.mxu0 %v5234_v25  ;;  %v4566_v1 = vpop.f32.mrb[19].mxu1  ;;  %v5282_v25 = vld [vmem:[#allocation8 + $0x230] ss:$8 sps:$4 sm:$0xff]  }
 0x237   :  { %2764 = vmatprep.subr.bf16.mxu0 %v5242_v26  ;;  %v2893_v45 = vadd.f32 %v4564_v62, %v2853_v55  ;;  %v5285_v26 = vld [vmem:[#allocation8 + $0x240] ss:$8 sps:$4 sm:$0xff]   ;;  %v5305_v55 = vld [vmem:[#allocation8 + $0x2a4] ss:$8 sps:$4 sm:$0xff]   ;;  %v5306_v59 = vld [vmem:[#allocation8 + $0x2b0] ss:$8 sps:$4 sm:$0xff]  }
 0x238   :  { %3730 = vmatpush1.bf16.msra.mxu1 %v5237_v27  ;;  %v5290_v27 = vld [vmem:[#allocation8 + $0x254] ss:$8 sps:$4 sm:$0xff]   ;;  %v5312_v63 = vld [vmem:[#allocation8 + $0x2d0] ss:$8 sps:$4 sm:$0xff]   ;;  %v5315_v1 = vld [vmem:[#allocation8 + $0x2e0] ss:$8 sps:$4 sm:$0xff]  }
 0x239   :  { %3731 = vmatprep.subr.bf16.mxu1 %v5245_v28  ;;  %v5314_v62 = vld [vmem:[#allocation8 + $0x2d4] ss:$8 sps:$4 sm:$0xff]  }
 0x23a   :  { %2765 = vmatpush1.bf16.msra.mxu0 %v5240_v32 }
 0x23b   :  { %2766 = vmatprep.subr.bf16.mxu0 %v5248_v34  ;;  %v5288_v34 = vld [vmem:[#allocation8 + $0x250] ss:$8 sps:$4 sm:$0xff]  }
 0x23c   :  { %3732 = vmatpush1.bf16.msra.mxu1 %v5243_v57 }
 0x23d   :  { %3733 = vmatprep.subr.bf16.mxu1 %v5251_v35 }
 0x23e   :  { %2767 = vmatpush1.bf16.msra.mxu0 %v5246_v36  ;;  %v5293_v36 = vld [vmem:[#allocation8 + $0x264] ss:$8 sps:$4 sm:$0xff]  }
 0x240   :  { %3734 = vmatpush1.bf16.msra.mxu1 %v5249_v37 }
 0x241   :  { %2769 = vmatmul.mubr.bf16.vlgmr.msra.gmra.mrb[8].mxu0 %v5715_v51  ;;  %3735 = vmatprep.subr.bf16.mxu1 %v5254_v38  ;;  %v533_v51 = vsub.s32 2, %v5748_v24 }
 0x243   :  { %v534_v60 = vrot.slane %v5751_v29, %v533_v51  ;;  %v5302_v51 = vld [vmem:[#allocation8 + $0x294] ss:$8 sps:$4 sm:$0xff]  }
 0x244   :  { %3736 = vmatpush1.bf16.msra.mxu1 %v5252_v49  ;;  %v5291_v49 = vld [vmem:[#allocation8 + $0x260] ss:$8 sps:$4 sm:$0xff]  }
 0x245   :  { %3737 = vmatprep.subr.bf16.mxu1 %v5257_v39  ;;  %v5296_v39 = vld [vmem:[#allocation8 + $0x274] ss:$8 sps:$4 sm:$0xff]  }
 0x248   :  { %3738 = vmatpush1.bf16.msra.mxu1 %v5255_v41 }
 0x249   :  { %3739 = vmatprep.subr.bf16.mxu1 %v5260_v44 }
 0x24c   :  { %3740 = vmatpush1.bf16.msra.mxu1 %v5258_v47 }
 0x24d   :  { %3741 = vmatprep.subr.bf16.mxu1 %v5263_v48  ;;  %v5299_v48 = vld [vmem:[#allocation8 + $0x284] ss:$8 sps:$4 sm:$0xff]  }
 0x250   :  { %3742 = vmatpush1.bf16.msra.mxu1 %v5261_v52 }
 0x251   :  { %3743 = vmatprep.subr.bf16.mxu1 %v5266_v53  ;;  %v5297_v53 = vld [vmem:[#allocation8 + $0x280] ss:$8 sps:$4 sm:$0xff]  }
 0x253   :  { %v4584_v28 = vpop.f32.mrb[20].mxu1 }
 0x254   :  { %v2524_v2 = vpop.f32.mrb[4].mxu0  ;;  %3744 = vmatpush1.bf16.msra.mxu1 %v5264_v58  ;;  %v4585_v32 = vpop.f32.mrb[21].mxu1  ;;  %v5308_v58 = vld [vmem:[#allocation8 + $0x2b4] ss:$8 sps:$4 sm:$0xff]  }
 0x255   :  { %v2525_v4 = vadd.f32 %v2524_v2, %v534_v60  ;;  %v2526_v5 = vpop.f32.mrb[5].mxu0  ;;  %3745 = vmatprep.subr.bf16.mxu1 %v5269_v61  ;;  %v4586_v57 = vadd.f32 %v4585_v32, %v4584_v28  ;;  %v4587_v35 = vpop.f32.mrb[22].mxu1  ;;  %v5311_v60 = vld [vmem:[#allocation8 + $0x2c4] ss:$8 sps:$4 sm:$0xff]   ;;  %v5309_v61 = vld [vmem:[#allocation8 + $0x2c0] ss:$8 sps:$4 sm:$0xff]  }
 0x256   :  { %v2527_v7 = vadd.f32 %v2526_v5, %v538_v42  ;;  %v2528_v8 = vpop.f32.mrb[6].mxu0  ;;  %v4588_v37 = vpop.f32.mrb[23].mxu1  ;;  %v5317_v42 = vld [vmem:[#allocation8 + $0x2e4] ss:$8 sps:$4 sm:$0xff]   ;;  %v5318_v2 = vld [vmem:[#allocation8 + $0x2f0] ss:$8 sps:$4 sm:$0xff]  }
 0x257   :  { %v4625_v30 = vadd.f32 %v5744_v22, %v2525_v4  ;;  %v2529_v9 = vpop.f32.mrb[7].mxu0  ;;  %v5281_v22 = vld [vmem:[#allocation8 + $0x224] ss:$8 sps:$4 sm:$0xff]   ;;  %v2933_v38 = vadd.f32 %v4586_v57, %v2893_v45  ;;  %v5320_v45 = vld [vmem:[#allocation8 + $0x2f4] ss:$8 sps:$4 sm:$0xff]  }
 0x258   :  { %v4627_v10 = vadd.f32 %v5746_v23, %v2527_v7  ;;  %3746 = vmatpush1.bf16.msra.mxu1 %v5267_v3  ;;  %v5279_v23 = vld [vmem:[#allocation8 + $0x220] ss:$8 sps:$4 sm:$0xff]   ;;  %v5323_v3 = vld [vmem:[#allocation8 + $0x304] ss:$8 sps:$4 sm:$0xff]   ;;  %v5349_v8 = vld [vmem:[#allocation11 + $0x50] sm:$0xff]  }
 0x259   :  { %v2980_v12 = vmax.f32 %v4625_v30, 0.0  ;;  %3747 = vmatprep.subr.bf16.mxu1 %v5272_v6  ;;  %v5345_v4 = vld [vmem:[#allocation11 + $0x40] sm:$0xff]   ;;  %v5347_v6 = vld [vmem:[#allocation11 + $0x48] sm:$0xff]   ;;  %v5350_v30 = vld [vmem:[#allocation11 + $0x10] sm:$0xff]  }
 0x25a   :  { %v2981_v14 = vmax.f32 %v4627_v10, 0.0  ;;  %v5346_v5 = vld [vmem:[#allocation11] sm:$0xff]   ;;  %4592 = vmatprep.subr.bf16.mxu0 %v5345_v4  ;;  %v5348_v7 = vld [vmem:[#allocation11 + $0x8] sm:$0xff]   ;;  %v5351_v9 = vld [vmem:[#allocation11 + $0x58] sm:$0xff]  }
 0x25b   :  { %v2987_v16 = vpack.c.bf16 %v2980_v12, %v2980_v12  ;;  %v2972_v41 = vpop.f32.mrb[24].mxu1  ;;  %4593 = vmatpush3.bf16.msra.mxu0 %v5346_v5  ;;  %v5352_v10 = vld [vmem:[#allocation11 + $0x18] sm:$0xff]   ;;  %v5354_v12 = vld [vmem:[#allocation11 + $0x20] sm:$0xff]  }
 0x25c   :  { %v2988_v17 = vpack.c.bf16 %v2981_v14, %v2981_v14  ;;  %3748 = vmatpush1.bf16.msra.mxu1 %v5270_v11  ;;  %v5775_v44 = vadd.f32 %v2972_v41, %v2933_v38  ;;  %v4618_v47 = vpop.f32.mrb[25].mxu1  ;;  %4594 = vmatprep.subr.bf16.mxu0 %v5347_v6  ;;  %v5353_v11 = vld [vmem:[#allocation11 + $0x60] sm:$0xff]   ;;  %v5356_v14 = vld [vmem:[#allocation11 + $0x28] sm:$0xff]   ;;  %v5338_v41 = vld [vmem:[#allocation8 + $0x354] ss:$8 sps:$4 sm:$0xff]  }
 0x25d   :  { %3758 = vmatprep.subr.bf16.mxu1 %v5275_v13  ;;  %v2975_v50 = vpop.f32.mrb[26].mxu1  ;;  %v5355_v13 = vld [vmem:[#allocation11 + $0x68] sm:$0xff]  }
 0x25e   :  { %3749 = vmatprep.mubr.bf16.mxu1 %v2988_v17  ;;  %v4619_v52 = vpop.f32.mrb[27].mxu1  ;;  %v545_v17 = vsub.s32 5, %v5748_v24  ;;  %v5321_v57 = vld [vmem:[#allocation8 + $0x300] ss:$8 sps:$4 sm:$0xff]   ;;  %v5329_v37 = vld [vmem:[#allocation8 + $0x324] ss:$8 sps:$4 sm:$0xff]  }
 0x25f   :  { %3750 = vmatmul.mubr.bf16.vlgmr.msra.gmra.mrb[28].mxu1 %v2987_v16  ;;  %4595 = vmatpush3.bf16.msra.mxu0 %v5348_v7  ;;  %v541_v16 = vsub.s32 4, %v5748_v24  ;;  %v5327_v38 = vld [vmem:[#allocation8 + $0x320] ss:$8 sps:$4 sm:$0xff]   ;;  %v5341_v47 = vld [vmem:[#allocation8 + $0x364] ss:$8 sps:$4 sm:$0xff]   ;;  %v2984_v52 = vmax.f32 %v5775_v44, 0.0 }
 0x260   :  { %3759 = vmatpush1.bf16.msra.mxu1 %v5273_v18  ;;  %4596 = vmatprep.subr.bf16.mxu0 %v5349_v8  ;;  %v5342_v50 = vld [vmem:[#allocation8 + $0x370] ss:$8 sps:$4 sm:$0xff]   ;;  %v4507_v7 = vld [vmem:[#allocation13] ss:$0 sm:$0xff] }
 0x261   :  { %3760 = vmatprep.subr.bf16.mxu1 %v5278_v19  ;;  %v542_v18 = vrot.slane %v5751_v29, %v541_v16  ;;  %v546_v19 = vrot.slane %v5751_v29, %v545_v17  ;;  %v5324_v29 = vld [vmem:[#allocation8 + $0x310] ss:$8 sps:$4 sm:$0xff]  }
 0x263   :  { %4597 = vmatpush3.bf16.msra.mxu0 %v5350_v30 }
 0x264   :  { %3761 = vmatpush1.bf16.msra.mxu1 %v5276_v20  ;;  %4598 = vmatprep.subr.bf16.mxu0 %v5351_v9 }
 0x265   :  { %3762 = vmatprep.subr.bf16.mxu1 %v5281_v22 }
 0x267   :  { %4599 = vmatpush3.bf16.msra.mxu0 %v5352_v10 }
 0x268   :  { %3763 = vmatpush1.bf16.msra.mxu1 %v5279_v23  ;;  %4600 = vmatprep.subr.bf16.mxu0 %v5353_v11 }
 0x269   :  { %3764 = vmatprep.subr.bf16.mxu1 %v5284_v21 }
 0x26b   :  { %4601 = vmatpush3.bf16.msra.mxu0 %v5354_v12 }
 0x26c   :  { %3765 = vmatpush1.bf16.msra.mxu1 %v5282_v25  ;;  %4602 = vmatprep.subr.bf16.mxu0 %v5355_v13 }
 0x26d   :  { %3766 = vmatprep.subr.bf16.mxu1 %v5287_v40 }
 0x26f   :  { %4603 = vmatpush3.bf16.msra.mxu0 %v5356_v14 }
 0x270   :  { %3767 = vmatpush1.bf16.msra.mxu1 %v5285_v26 }
 0x271   :  { %3768 = vmatprep.subr.bf16.mxu1 %v5290_v27 }
 0x274   :  { %3769 = vmatpush1.bf16.msra.mxu1 %v5288_v34 }
 0x275   :  { %3770 = vmatprep.subr.bf16.mxu1 %v5293_v36  ;;  %v5326_v36 = vld [vmem:[#allocation8 + $0x314] ss:$8 sps:$4 sm:$0xff]  }
 0x278   :  { %3771 = vmatpush1.bf16.msra.mxu1 %v5291_v49  ;;  %v5335_v49 = vld [vmem:[#allocation8 + $0x344] ss:$8 sps:$4 sm:$0xff]  }
 0x279   :  { %3772 = vmatprep.subr.bf16.mxu1 %v5296_v39  ;;  %v5333_v39 = vld [vmem:[#allocation8 + $0x340] ss:$8 sps:$4 sm:$0xff]  }
 0x27c   :  { %3773 = vmatpush1.bf16.msra.mxu1 %v5294_v46  ;;  %v5336_v46 = vld [vmem:[#allocation8 + $0x350] ss:$8 sps:$4 sm:$0xff]  }
 0x27d   :  { %3774 = vmatprep.subr.bf16.mxu1 %v5299_v48  ;;  %v5344_v48 = vld [vmem:[#allocation8 + $0x374] ss:$8 sps:$4 sm:$0xff]  }
 0x280   :  { %3775 = vmatpush1.bf16.msra.mxu1 %v5297_v53  ;;  %v2991_v53 = vpack.c.bf16 %v2984_v52, %v2984_v52 }
 0x281   :  { %3776 = vmatprep.subr.bf16.mxu1 %v5302_v51  ;;  %v5357_v51 = vld [vmem:[#allocation11 + $0x70] sm:$0xff]  }
 0x282   :  { %4604 = vmatprep.subr.bf16.mxu0 %v5357_v51 }
 0x284   :  { %3777 = vmatpush1.bf16.msra.mxu1 %v5300_v54  ;;  %v5358_v54 = vld [vmem:[#allocation11 + $0x30] sm:$0xff]  }
 0x285   :  { %3778 = vmatprep.subr.bf16.mxu1 %v5305_v55  ;;  %4605 = vmatpush3.bf16.msra.mxu0 %v5358_v54  ;;  %v5359_v55 = vld [vmem:[#allocation11 + $0x78] sm:$0xff]  }
 0x286   :  { %4606 = vmatprep.subr.bf16.mxu0 %v5359_v55 }
 0x288   :  { %3779 = vmatpush1.bf16.msra.mxu1 %v5303_v56  ;;  %v5360_v56 = vld [vmem:[#allocation11 + $0x38] sm:$0xff]  }
 0x289   :  { %3780 = vmatprep.subr.bf16.mxu1 %v5308_v58  ;;  %4607 = vmatpush3.bf16.msra.mxu0 %v5360_v56  ;;  %v3104_v58 = vld [vmem:[#allocation10] sm:$0x3] }
 0x28c   :  { %3781 = vmatpush1.bf16.msra.mxu1 %v5306_v59  ;;  %v3109_v59 = vrot.slane %v3104_v58, %v525_v43 }
 0x28d   :  { %3782 = vmatprep.subr.bf16.mxu1 %v5311_v60  ;;  %v3113_v60 = vrot.slane %v3104_v58, %v529_v31 }
 0x290   :  { %3783 = vmatpush1.bf16.msra.mxu1 %v5309_v61 }
 0x291   :  { %3784 = vmatprep.subr.bf16.mxu1 %v5314_v62 }
 0x294   :  { %3785 = vmatpush1.bf16.msra.mxu1 %v5312_v63 }
 0x295   :  { %3786 = vmatprep.subr.bf16.mxu1 %v5317_v42 }
 0x298   :  { %3787 = vmatpush1.bf16.msra.mxu1 %v5315_v1 }
 0x299   :  { %3788 = vmatprep.subr.bf16.mxu1 %v5320_v45 }
 0x29c   :  { %3789 = vmatpush1.bf16.msra.mxu1 %v5318_v2 }
 0x29d   :  { %3799 = vmatprep.subr.bf16.mxu1 %v5323_v3 }
 0x314   :  { %v2770_v20 = vpop.f32.mrb[8].mxu0 }
 0x315   :  { %v4628_v22 = vadd.f32 %v2770_v20, %v542_v18  ;;  %v2772_v23 = vpop.f32.mrb[9].mxu0 }
 0x316   :  { %v4630_v21 = vadd.f32 %v2772_v23, %v546_v19  ;;  %v2774_v25 = vpop.f32.mrb[10].mxu0 }
 0x317   :  { %v4629_v40 = vadd.f32 %v4628_v22, %v5754_v15  ;;  %v2775_v26 = vpop.f32.mrb[11].mxu0  ;;  %v5332_v15 = vld [vmem:[#allocation8 + $0x334] ss:$8 sps:$4 sm:$0xff]  }
 0x318   :  { %v4631_v27 = vadd.f32 %v4630_v21, %v5756_v33  ;;  %v5330_v33 = vld [vmem:[#allocation8 + $0x330] ss:$8 sps:$4 sm:$0xff]  }
 0x319   :  { %v2982_v28 = vmax.f32 %v4629_v40, 0.0 }
 0x31a   :  { %v2983_v32 = vmax.f32 %v4631_v27, 0.0 }
 0x31b   :  { %v2989_v35 = vpack.c.bf16 %v2982_v28, %v2982_v28 }
 0x31c   :  { %v2990_v34 = vpack.c.bf16 %v2983_v32, %v2983_v32 }
 0x31e   :  { %3790 = vmatprep.mubr.bf16.mxu1 %v2990_v34 }
 0x31f   :  { %3791 = vmatmul.mubr.bf16.vlgmr.msra.gmra.mrb[28].mxu1 %v2989_v35 }
 0x320   :  { %3800 = vmatpush1.bf16.msra.mxu1 %v5321_v57  ;;  %3831 = vmatprep.mubr.bf16.mxu1 %v5564_v0  ;;  %v5339_v0 = vld [vmem:[#allocation8 + $0x360] ss:$8 sps:$4 sm:$0xff]  }
 0x321   :  { %3801 = vmatprep.subr.bf16.mxu1 %v5326_v36 }
 0x324   :  { %3802 = vmatpush1.bf16.msra.mxu1 %v5324_v29 }
 0x325   :  { %3803 = vmatprep.subr.bf16.mxu1 %v5329_v37 }
 0x328   :  { %3804 = vmatpush1.bf16.msra.mxu1 %v5327_v38 }
 0x329   :  { %3805 = vmatprep.subr.bf16.mxu1 %v5332_v15 }
 0x32c   :  { %3806 = vmatpush1.bf16.msra.mxu1 %v5330_v33 }
 0x32d   :  { %3807 = vmatprep.subr.bf16.mxu1 %v5335_v49 }
 0x330   :  { %3808 = vmatpush1.bf16.msra.mxu1 %v5333_v39 }
 0x331   :  { %3809 = vmatprep.subr.bf16.mxu1 %v5338_v41 }
 0x334   :  { %3810 = vmatpush1.bf16.msra.mxu1 %v5336_v46 }
 0x335   :  { %3811 = vmatprep.subr.bf16.mxu1 %v5341_v47 }
 0x338   :  { %3812 = vmatpush1.bf16.msra.mxu1 %v5339_v0 }
 0x339   :  { %3813 = vmatprep.subr.bf16.mxu1 %v5344_v48 }
 0x33c   :  { %3814 = vmatpush1.bf16.msra.mxu1 %v5342_v50 }
 0x33f   :  { %3832 = vmatmul.mubr.bf16.vlgmr.msra.gmra.mrb[28].mxu1 %v2991_v53 }
 0x412   :  { %v3833_v44 = vpop.f32.mrb[28].mxu1 }
 0x413   :  { %v4632_v61 = vadd.f32 %v3833_v44, %v3109_v59  ;;  %v3835_v62 = vpop.f32.mrb[29].mxu1 }
 0x414   :  { %v4633_v63 = vadd.f32 %v3835_v62, %v3113_v60  ;;  %v3837_v42 = vpop.f32.mrb[30].mxu1 }
 0x415   :  { %v3840_v1 = vmax.f32 %v4632_v61, 0.0  ;;  %v3838_v45 = vpop.f32.mrb[31].mxu1 }
 0x416   :  { %v3841_v2 = vmax.f32 %v4633_v63, 0.0 }
 0x417   :  { %v3842_v4 = vpack.c.bf16 %v3840_v1, %v3840_v1 }
 0x418   :  { %v3843_v3 = vpack.c.bf16 %v3841_v2, %v3841_v2 }
 0x41a   :  { %4011 = vmatprep.mubr.bf16.mxu0 %v3843_v3 }
 0x41b   :  { %4012 = vmatmul.mubr.bf16.vlgmr.msra.gmra.mrb[12].mxu0 %v3842_v4 }
 0x4ee   :  { %v4608_v5 = vpop.f32.mrb[12].mxu0 }
 0x4ef   :  { %v4609_v6 = vpop.f32.mrb[13].mxu0 }
 0x4f0   :  { %v4610_v8 = vadd.f32 %v4609_v6, %v4608_v5  ;;  %v4611_v43 = vpop.f32.mrb[14].mxu0 }
 0x4f1   :  { %v4612_v30 = vpop.f32.mrb[15].mxu0 }
 0x4f2   :  { %v4014_v24 = vadd.f32 %v4610_v8, %v4507_v7 }
 0x4f4   :  { %4019 = vmax.xlane.f32.xlu0 %v4014_v24 }
 0x581   :  { %v4020_v31 = vpop.xlane.xlu0 %4019 }
 0x582   :  { %v4021_v9 = vsub.f32 %v4014_v24, %v4020_v31 }
 0x584   :  { %v4022_v10 = vmul.f32 1.442695, %v4021_v9 }
 0x586   :  { %5361 = vpow2.f32 %v4022_v10 }
 0x590   :  { %v5362_v11 = vpop.eup %5361 }
 0x591   :  { %4024 = vadd.xlane.f32.xlu0 %v5362_v11 }
 0x61e   :  { %v4025_v12 = vpop.xlane.xlu0 %4024 }
 0x61f   :  { %5363 = vlog2.f32 %v4025_v12 }
 0x629   :  { %v5364_v13 = vpop.eup %5363 }
 0x62a   :  { %v4027_v14 = vmul.f32 0.6931472, %v5364_v13 }
 0x62c   :  { %v4028_v16 = vsub.f32 %v4021_v9, %v4027_v14 }
 0x62e   :  { %4029 = vst [vmem:[#allocation14] sm:$0xff] %v4028_v16 }
 0x62f   :  { %5530 = shalt.err (!%p5527_p4)
}
 0x630   :  { %s5531_s16 = scalar_lea.hbm %s5808_s7, 128 }
 0x631   :  { %p5532_p5 = scmp.ne.s32.totalorder %s5808_s7, %s5531_s16  ;;  %p5535_p6 = scmp.lt.u32.totalorder %s5531_s16, %s5808_s7 }
 0x633   :  { %p5537_p7 = pnand %p5535_p6, %p5532_p5 }
 0x635   :  { %5540 = shalt.err (!%p5537_p7)
}
 0x636   :  { %4039 = dma.vmem_to_hbm [thread:$0]  %s4037_s14, 128, %s5808_s7, [#allocation4]  }
 0x637   :  { %5549 = dma.done.wait [#allocation4], 128  }
 0x638   :  { %5550 = vsyncadd [#allocation4], 4294967168 }
 0x639   :  { %4043 = vsyncpa [#allocation3], 1 }
 0x63a   :  { %4044 = vsyncpa [#allocation6], 1 }
 0x63b   :  { %4045 = vsyncpa [#allocation9], 1 }
 0x63c   :  { %4046 = vsyncpa [#allocation12], 1 }
 0x63d   :  { %4047 = vsyncpa [#allocation4], 1 }

</bundles_post_ra>
